<compile_context>
chip_gen: v7x
topology: tpu7x:2x2x1
jax: 0.10.0
libtpu: 0.0.40
codegen_flags: <defaults>
</compile_context>

<pallas_src>
import functools

import jax
import jax.numpy as jnp
import numpy as np
from jax.experimental import pallas as pl
from jax.experimental.pallas import tpu as pltpu

LN_EPS = 1e-5  # matches the PyTorch module


def _biasfree_ln_kernel(x_ref, w_ref, o_ref, *, eps):
    x = x_ref[...].astype(jnp.float32)                 # (TR, C)
    w = w_ref[...].astype(jnp.float32)                 # (1,  C), resident across grid
    mean = jnp.mean(x, axis=-1, keepdims=True)
    d = x - mean
    var = jnp.mean(d * d, axis=-1, keepdims=True)      # biased variance (ddof=0)
    # NOTE: x is NOT mean-centered in the output — that is what "bias free" means here.
    o_ref[...] = (x * jax.lax.rsqrt(var + eps) * w).astype(o_ref.dtype)


def biasfree_layernorm(x, weight, *, eps=LN_EPS, block_rows=1024):
    """x: (..., C), weight: (C,). Returns same shape/dtype as x."""
    orig_shape = x.shape
    c = orig_shape[-1]
    r = int(np.prod(orig_shape[:-1])) if len(orig_shape) > 1 else 1

    x2 = x.reshape(r, c)            # collapse of contiguous leading dims: no copy
    w2 = weight.reshape(1, c)

    # Row-tile sizing: biggest tile under a ~2 MiB VMEM budget (f32 compute),
    # rounded to a multiple of 8 (sublane requirement), capped at block_rows.
    vmem_tile_budget = 2 * 1024 * 1024
    tr_cap = max(8, (vmem_tile_budget // (c * 4)) // 8 * 8)
    tr = min(block_rows, tr_cap)

    if r <= tr:
        # Single tile covering all rows; full-array dims are always legal block dims.
        tr = r
        rp = r
    else:
        # tr is a multiple of 8; pad rows (cheap, < tr rows) so the grid divides evenly.
        rp = ((r + tr - 1) // tr) * tr
        if rp != r:
            x2 = jnp.pad(x2, ((0, rp - r), (0, 0)))

    grid = (rp // tr,)

    out = pl.pallas_call(
        functools.partial(_biasfree_ln_kernel, eps=eps),
        out_shape=jax.ShapeDtypeStruct((rp, c), x.dtype),
        grid_spec=pltpu.PrefetchScalarGridSpec(
            num_scalar_prefetch=0,
            grid=grid,
            in_specs=[
                pl.BlockSpec((tr, c), lambda i: (i, 0)),   # row tile of x (full channel dim)
                pl.BlockSpec((1, c), lambda i: (0, 0)),    # weight, resident across grid
            ],
            out_specs=pl.BlockSpec((tr, c), lambda i: (i, 0)),
        ),
        compiler_params=pltpu.CompilerParams(
            dimension_semantics=("parallel",),             # shard the row axis across TCs
        ),
    )(x2, w2)

    if rp != r:
        out = out[:r]
    return out.reshape(orig_shape)


# ----------------------------- reference (plain JAX) -------------------------
def biasfree_layernorm_ref(x, weight, eps=LN_EPS):
    var = jnp.var(x, axis=-1, keepdims=True)   # ddof=0 == torch unbiased=False
    return x / jnp.sqrt(var + eps) * weight


if __name__ == "__main__":
    # (B, H, W, C) with the channel dim normalized, matching the rearranged
    # "b (h w) c" usage of BiasFree_LayerNorm.
    b, h, w, c = 2, 16, 16, 48

    key = jax.random.PRNGKey(0)
    kx, kw = jax.random.split(key)
    x = jax.random.normal(kx, (b, h, w, c), jnp.float32) * 2.0 + 0.5
    # module inits weight to ones; perturb it so the scale path is actually exercised
    weight = 1.0 + 0.1 * jax.random.normal(kw, (c,), jnp.float32)

    out = biasfree_layernorm(x, weight)
    out = jax.block_until_ready(out)

    ref = biasfree_layernorm_ref(x, weight)
    np.testing.assert_allclose(np.asarray(out), np.asarray(ref), rtol=2e-5, atol=2e-5)
    print("KERNEL_OK")
</pallas_src>

<mosaic_0001>
module attributes {stable_mosaic.version = 11 : i64} {
  func.func @_biasfree_ln_kernel(%arg0: i32, %arg1: memref<512x48xf32, #tpu.memory_space<vmem>>, %arg2: memref<1x48xf32, #tpu.memory_space<vmem>>, %arg3: memref<512x48xf32, #tpu.memory_space<vmem>>) attributes {dimension_semantics = [#tpu.dimension_semantics<parallel>], iteration_bounds = array<i64: 1>, scalar_prefetch = 0 : i64, scratch_operands = 0 : i64, tpu.core_type = #tpu.core_type<tc>, window_params = [{transform_indices = @transform_0, window_bounds = array<i64: 512, 48>}, {pipeline_mode = #tpu.pipeline_mode<synchronous>, transform_indices = @transform_1, window_bounds = array<i64: 1, 48>}, {transform_indices = @transform_2, window_bounds = array<i64: 512, 48>}]} {
    %c0 = arith.constant 0 : index
    %c0_0 = arith.constant 0 : index
    %0 = vector.load %arg1[%c0, %c0_0] : memref<512x48xf32, #tpu.memory_space<vmem>>, vector<512x48xf32>
    %c0_1 = arith.constant 0 : index
    %c0_2 = arith.constant 0 : index
    %1 = vector.load %arg2[%c0_1, %c0_2] : memref<1x48xf32, #tpu.memory_space<vmem>>, vector<1x48xf32>
    %cst = arith.constant dense<0.000000e+00> : vector<512xf32>
    %2 = vector.multi_reduction <add>, %0, %cst [1] : vector<512x48xf32> to vector<512xf32>
    %3 = vector.shape_cast %2 : vector<512xf32> to vector<512x1xf32>
    %cst_3 = arith.constant 4.800000e+01 : f32
    %4 = vector.broadcast %cst_3 : f32 to vector<512x1xf32>
    %5 = arith.divf %3, %4 : vector<512x1xf32>
    %6 = vector.broadcast %5 : vector<512x1xf32> to vector<512x48xf32>
    %7 = arith.subf %0, %6 : vector<512x48xf32>
    %8 = arith.mulf %7, %7 : vector<512x48xf32>
    %cst_4 = arith.constant dense<0.000000e+00> : vector<512xf32>
    %9 = vector.multi_reduction <add>, %8, %cst_4 [1] : vector<512x48xf32> to vector<512xf32>
    %10 = vector.shape_cast %9 : vector<512xf32> to vector<512x1xf32>
    %cst_5 = arith.constant 4.800000e+01 : f32
    %11 = vector.broadcast %cst_5 : f32 to vector<512x1xf32>
    %12 = arith.divf %10, %11 : vector<512x1xf32>
    %cst_6 = arith.constant 9.99999974E-6 : f32
    %13 = vector.broadcast %cst_6 : f32 to vector<512x1xf32>
    %14 = arith.addf %12, %13 : vector<512x1xf32>
    %15 = math.rsqrt %14 : vector<512x1xf32>
    %16 = vector.broadcast %15 : vector<512x1xf32> to vector<512x48xf32>
    %17 = arith.mulf %0, %16 : vector<512x48xf32>
    %18 = vector.broadcast %1 : vector<1x48xf32> to vector<512x48xf32>
    %19 = arith.mulf %17, %18 : vector<512x48xf32>
    %c0_7 = arith.constant 0 : index
    %c0_8 = arith.constant 0 : index
    %20 = vector.load %arg3[%c0_7, %c0_8] : memref<512x48xf32, #tpu.memory_space<vmem>>, vector<512x48xf32>
    tpu.vector_store %arg3[%c0_7, %c0_8], %19 {strides = array<i32>} : memref<512x48xf32, #tpu.memory_space<vmem>>, vector<512x48xf32>,
    return
  }
  func.func @transform_0(%arg0: i32) -> (i32, i32) {
    %c0_i32 = arith.constant 0 : i32
    %c0_i32_0 = arith.constant 0 : i32
    return %arg0, %c0_i32 : i32, i32
  }
  func.func @transform_1(%arg0: i32) -> (i32, i32) {
    %c0_i32 = arith.constant 0 : i32
    %c0_i32_0 = arith.constant 0 : i32
    %c0_i32_1 = arith.constant 0 : i32
    return %c0_i32, %c0_i32_0 : i32, i32
  }
  func.func @transform_2(%arg0: i32) -> (i32, i32) {
    %c0_i32 = arith.constant 0 : i32
    %c0_i32_0 = arith.constant 0 : i32
    return %arg0, %c0_i32 : i32, i32
  }
}

</mosaic_0001>

<bundles_post_ra>
// kernel: tpu_custom_call.1
= control target key start
LH: loop header
LB: loop body
LE: loop exit
PB: predicated region body
PF: predicated region fallthrough
CT: control target
= control target key end

     0   :  { %vm76_vm0 = vcmask 392192   ;;  %s2349_s0 = inlined_call_operand.vmem [shape: f32[512,48], index: 0, kind: input, shape index: {}]   ;;  %s2350_s1 = inlined_call_operand.vmem [shape: f32[1,48], index: 1, kind: input, shape index: {}]   ;;  %s2351_s2 = inlined_call_operand.vmem [shape: f32[512,48], index: 2, kind: output, shape index: {}]  }
   0x1   :  { %v1259_v0 = vld [vmem:[%s2349_s0] sm:$0xff]  ;;  %v1264_v1 = vld [vmem:[%s2349_s0 + $0x10] sm:$0xff]  ;;  %v1269_v2 = vld [vmem:[%s2349_s0 + $0x8] sm:$0xff] }
   0x2   :  { %v77_v3 = vsel %vm76_vm0, %v1259_v0, 0.0  ;;  %v83_v4 = vsel %vm76_vm0, %v1264_v1, 0.0  ;;  %v1278_v5 = vld [vmem:[%s2349_s0 + $0x18] sm:$0xff]  ;;  %v80_v6 = vsel %vm76_vm0, %v1269_v2, 0.0  ;;  %v1287_v8 = vld [vmem:[%s2349_s0 + $0x28] sm:$0xff]  ;;  %v1292_v9 = vld [vmem:[%s2349_s0 + $0x20] sm:$0xff] }
   0x3   :  { %78 = vadd.xlane.f32.xlu0 %v77_v3  ;;  %84 = vadd.xlane.f32.xlu1 %v83_v4  ;;  %v86_v7 = vsel %vm76_vm0, %v1278_v5, 0.0  ;;  %v92_v10 = vsel %vm76_vm0, %v1287_v8, 0.0  ;;  %v89_v11 = vsel %vm76_vm0, %v1292_v9, 0.0  ;;  %v1301_v12 = vld [vmem:[%s2349_s0 + $0x38] sm:$0xff]  ;;  %v1306_v13 = vld [vmem:[%s2349_s0 + $0x30] sm:$0xff]  ;;  %v1315_v16 = vld [vmem:[%s2349_s0 + $0x48] sm:$0xff] }
   0x4   :  { %v98_v14 = vsel %vm76_vm0, %v1301_v12, 0.0  ;;  %v95_v15 = vsel %vm76_vm0, %v1306_v13, 0.0  ;;  %v1320_v17 = vld [vmem:[%s2349_s0 + $0x40] sm:$0xff]  ;;  %v104_v18 = vsel %vm76_vm0, %v1315_v16, 0.0  ;;  %v1329_v20 = vld [vmem:[%s2349_s0 + $0x58] sm:$0xff]  ;;  %v1334_v21 = vld [vmem:[%s2349_s0 + $0x50] sm:$0xff] }
   0x5   :  { %v101_v19 = vsel %vm76_vm0, %v1320_v17, 0.0  ;;  %v110_v22 = vsel %vm76_vm0, %v1329_v20, 0.0  ;;  %v107_v23 = vsel %vm76_vm0, %v1334_v21, 0.0  ;;  %v1343_v24 = vld [vmem:[%s2349_s0 + $0x68] sm:$0xff]  ;;  %v1348_v25 = vld [vmem:[%s2349_s0 + $0x60] sm:$0xff]  ;;  %v1357_v28 = vld [vmem:[%s2349_s0 + $0x78] sm:$0xff] }
   0x6   :  { %v116_v26 = vsel %vm76_vm0, %v1343_v24, 0.0  ;;  %v113_v27 = vsel %vm76_vm0, %v1348_v25, 0.0  ;;  %v1362_v29 = vld [vmem:[%s2349_s0 + $0x70] sm:$0xff]  ;;  %v122_v30 = vsel %vm76_vm0, %v1357_v28, 0.0  ;;  %v1371_v32 = vld [vmem:[%s2349_s0 + $0x88] sm:$0xff]  ;;  %v1376_v33 = vld [vmem:[%s2349_s0 + $0x80] sm:$0xff] }
   0x7   :  { %81 = vadd.xlane.f32.xlu0 %v80_v6  ;;  %87 = vadd.xlane.f32.xlu1 %v86_v7  ;;  %v119_v31 = vsel %vm76_vm0, %v1362_v29, 0.0  ;;  %v128_v34 = vsel %vm76_vm0, %v1371_v32, 0.0  ;;  %v125_v35 = vsel %vm76_vm0, %v1376_v33, 0.0  ;;  %v1385_v36 = vld [vmem:[%s2349_s0 + $0x98] sm:$0xff]  ;;  %v1390_v37 = vld [vmem:[%s2349_s0 + $0x90] sm:$0xff]  ;;  %v1399_v40 = vld [vmem:[%s2349_s0 + $0xa8] sm:$0xff] }
   0x8   :  { %v134_v38 = vsel %vm76_vm0, %v1385_v36, 0.0  ;;  %v131_v39 = vsel %vm76_vm0, %v1390_v37, 0.0  ;;  %v1404_v41 = vld [vmem:[%s2349_s0 + $0xa0] sm:$0xff]  ;;  %v140_v42 = vsel %vm76_vm0, %v1399_v40, 0.0  ;;  %v1413_v44 = vld [vmem:[%s2349_s0 + $0xb8] sm:$0xff]  ;;  %v1418_v45 = vld [vmem:[%s2349_s0 + $0xb0] sm:$0xff] }
   0x9   :  { %v137_v43 = vsel %vm76_vm0, %v1404_v41, 0.0  ;;  %v146_v46 = vsel %vm76_vm0, %v1413_v44, 0.0  ;;  %v143_v47 = vsel %vm76_vm0, %v1418_v45, 0.0  ;;  %v1427_v48 = vld [vmem:[%s2349_s0 + $0xc8] sm:$0xff]  ;;  %v1432_v49 = vld [vmem:[%s2349_s0 + $0xc0] sm:$0xff]  ;;  %v1441_v52 = vld [vmem:[%s2349_s0 + $0xd8] sm:$0xff] }
   0xa   :  { %v152_v50 = vsel %vm76_vm0, %v1427_v48, 0.0  ;;  %v149_v51 = vsel %vm76_vm0, %v1432_v49, 0.0  ;;  %v1446_v53 = vld [vmem:[%s2349_s0 + $0xd0] sm:$0xff]  ;;  %v158_v54 = vsel %vm76_vm0, %v1441_v52, 0.0  ;;  %v1455_v56 = vld [vmem:[%s2349_s0 + $0xe8] sm:$0xff]  ;;  %v1460_v57 = vld [vmem:[%s2349_s0 + $0xe0] sm:$0xff] }
   0xb   :  { %93 = vadd.xlane.f32.xlu1 %v92_v10  ;;  %90 = vadd.xlane.f32.xlu0 %v89_v11  ;;  %v155_v55 = vsel %vm76_vm0, %v1446_v53, 0.0  ;;  %v164_v58 = vsel %vm76_vm0, %v1455_v56, 0.0  ;;  %v161_v59 = vsel %vm76_vm0, %v1460_v57, 0.0  ;;  %v1469_v60 = vld [vmem:[%s2349_s0 + $0xf8] sm:$0xff]  ;;  %v1474_v61 = vld [vmem:[%s2349_s0 + $0xf0] sm:$0xff]  ;;  %v1483_v3 = vld [vmem:[%s2349_s0 + $0x108] sm:$0xff] }
   0xc   :  { %v170_v62 = vsel %vm76_vm0, %v1469_v60, 0.0  ;;  %v167_v63 = vsel %vm76_vm0, %v1474_v61, 0.0  ;;  %v1488_v4 = vld [vmem:[%s2349_s0 + $0x100] sm:$0xff]  ;;  %v176_v6 = vsel %vm76_vm0, %v1483_v3, 0.0  ;;  %v1497_v10 = vld [vmem:[%s2349_s0 + $0x118] sm:$0xff]  ;;  %v1502_v11 = vld [vmem:[%s2349_s0 + $0x110] sm:$0xff] }
   0xd   :  { %v173_v7 = vsel %vm76_vm0, %v1488_v4, 0.0 }
   0xf   :  { %99 = vadd.xlane.f32.xlu1 %v98_v14  ;;  %96 = vadd.xlane.f32.xlu0 %v95_v15  ;;  %v182_v14 = vsel %vm76_vm0, %v1497_v10, 0.0  ;;  %v179_v15 = vsel %vm76_vm0, %v1502_v11, 0.0 }
  0x13   :  { %105 = vadd.xlane.f32.xlu1 %v104_v18  ;;  %102 = vadd.xlane.f32.xlu0 %v101_v19  ;;  %v1511_v18 = vld [vmem:[%s2349_s0 + $0x128] sm:$0xff]  ;;  %v1516_v19 = vld [vmem:[%s2349_s0 + $0x120] sm:$0xff] }
  0x17   :  { %111 = vadd.xlane.f32.xlu1 %v110_v22  ;;  %108 = vadd.xlane.f32.xlu0 %v107_v23  ;;  %v188_v22 = vsel %vm76_vm0, %v1511_v18, 0.0  ;;  %v185_v23 = vsel %vm76_vm0, %v1516_v19, 0.0 }
  0x1b   :  { %117 = vadd.xlane.f32.xlu1 %v116_v26  ;;  %114 = vadd.xlane.f32.xlu0 %v113_v27  ;;  %v1525_v26 = vld [vmem:[%s2349_s0 + $0x138] sm:$0xff]  ;;  %v1530_v27 = vld [vmem:[%s2349_s0 + $0x130] sm:$0xff] }
  0x1f   :  { %123 = vadd.xlane.f32.xlu1 %v122_v30  ;;  %120 = vadd.xlane.f32.xlu0 %v119_v31  ;;  %v194_v30 = vsel %vm76_vm0, %v1525_v26, 0.0  ;;  %v191_v31 = vsel %vm76_vm0, %v1530_v27, 0.0 }
  0x23   :  { %129 = vadd.xlane.f32.xlu1 %v128_v34  ;;  %126 = vadd.xlane.f32.xlu0 %v125_v35  ;;  %v1539_v34 = vld [vmem:[%s2349_s0 + $0x148] sm:$0xff]  ;;  %v1544_v35 = vld [vmem:[%s2349_s0 + $0x140] sm:$0xff] }
  0x27   :  { %135 = vadd.xlane.f32.xlu1 %v134_v38  ;;  %132 = vadd.xlane.f32.xlu0 %v131_v39  ;;  %v200_v38 = vsel %vm76_vm0, %v1539_v34, 0.0  ;;  %v197_v39 = vsel %vm76_vm0, %v1544_v35, 0.0 }
  0x2b   :  { %141 = vadd.xlane.f32.xlu1 %v140_v42  ;;  %138 = vadd.xlane.f32.xlu0 %v137_v43  ;;  %v1553_v42 = vld [vmem:[%s2349_s0 + $0x158] sm:$0xff]  ;;  %v1558_v43 = vld [vmem:[%s2349_s0 + $0x150] sm:$0xff] }
  0x2f   :  { %147 = vadd.xlane.f32.xlu1 %v146_v46  ;;  %144 = vadd.xlane.f32.xlu0 %v143_v47  ;;  %v206_v46 = vsel %vm76_vm0, %v1553_v42, 0.0  ;;  %v203_v47 = vsel %vm76_vm0, %v1558_v43, 0.0 }
  0x33   :  { %153 = vadd.xlane.f32.xlu1 %v152_v50  ;;  %150 = vadd.xlane.f32.xlu0 %v149_v51  ;;  %v1567_v50 = vld [vmem:[%s2349_s0 + $0x168] sm:$0xff]  ;;  %v1572_v51 = vld [vmem:[%s2349_s0 + $0x160] sm:$0xff] }
  0x37   :  { %159 = vadd.xlane.f32.xlu1 %v158_v54  ;;  %156 = vadd.xlane.f32.xlu0 %v155_v55  ;;  %v212_v54 = vsel %vm76_vm0, %v1567_v50, 0.0  ;;  %v209_v55 = vsel %vm76_vm0, %v1572_v51, 0.0 }
  0x3b   :  { %165 = vadd.xlane.f32.xlu1 %v164_v58  ;;  %162 = vadd.xlane.f32.xlu0 %v161_v59  ;;  %v1581_v58 = vld [vmem:[%s2349_s0 + $0x178] sm:$0xff]  ;;  %v1586_v59 = vld [vmem:[%s2349_s0 + $0x170] sm:$0xff] }
  0x3f   :  { %171 = vadd.xlane.f32.xlu1 %v170_v62  ;;  %168 = vadd.xlane.f32.xlu0 %v167_v63  ;;  %v218_v62 = vsel %vm76_vm0, %v1581_v58, 0.0  ;;  %v215_v63 = vsel %vm76_vm0, %v1586_v59, 0.0 }
  0x43   :  { %177 = vadd.xlane.f32.xlu1 %v176_v6  ;;  %174 = vadd.xlane.f32.xlu0 %v173_v7  ;;  %v1595_v6 = vld [vmem:[%s2349_s0 + $0x188] sm:$0xff]  ;;  %v1600_v7 = vld [vmem:[%s2349_s0 + $0x180] sm:$0xff] }
  0x44   :  { %2368 = vst [vmem:[#allocation2_spill] sm:$0xff] %v1595_v6  ;;  %2369 = vst [vmem:[#allocation3_spill] sm:$0xff] %v1600_v7 }
  0x47   :  { %183 = vadd.xlane.f32.xlu1 %v182_v14  ;;  %180 = vadd.xlane.f32.xlu0 %v179_v15  ;;  %v224_v14 = vsel %vm76_vm0, %v1595_v6, 0.0  ;;  %v221_v15 = vsel %vm76_vm0, %v1600_v7, 0.0 }
  0x4b   :  { %189 = vadd.xlane.f32.xlu1 %v188_v22  ;;  %186 = vadd.xlane.f32.xlu0 %v185_v23  ;;  %v1609_v22 = vld [vmem:[%s2349_s0 + $0x198] sm:$0xff]  ;;  %v1614_v23 = vld [vmem:[%s2349_s0 + $0x190] sm:$0xff] }
  0x4c   :  { %2370 = vst [vmem:[#allocation4_spill] sm:$0xff] %v1609_v22  ;;  %2371 = vst [vmem:[#allocation5_spill] sm:$0xff] %v1614_v23 }
  0x4f   :  { %195 = vadd.xlane.f32.xlu1 %v194_v30  ;;  %192 = vadd.xlane.f32.xlu0 %v191_v31  ;;  %v230_v30 = vsel %vm76_vm0, %v1609_v22, 0.0  ;;  %v227_v31 = vsel %vm76_vm0, %v1614_v23, 0.0 }
  0x53   :  { %201 = vadd.xlane.f32.xlu1 %v200_v38  ;;  %198 = vadd.xlane.f32.xlu0 %v197_v39  ;;  %v1623_v38 = vld [vmem:[%s2349_s0 + $0x1a8] sm:$0xff]  ;;  %v1628_v39 = vld [vmem:[%s2349_s0 + $0x1a0] sm:$0xff] }
  0x54   :  { %2372 = vst [vmem:[#allocation6_spill] sm:$0xff] %v1623_v38  ;;  %2373 = vst [vmem:[#allocation7_spill] sm:$0xff] %v1628_v39 }
  0x57   :  { %207 = vadd.xlane.f32.xlu1 %v206_v46  ;;  %204 = vadd.xlane.f32.xlu0 %v203_v47  ;;  %v236_v46 = vsel %vm76_vm0, %v1623_v38, 0.0  ;;  %v233_v47 = vsel %vm76_vm0, %v1628_v39, 0.0 }
  0x5b   :  { %213 = vadd.xlane.f32.xlu1 %v212_v54  ;;  %210 = vadd.xlane.f32.xlu0 %v209_v55  ;;  %v1637_v54 = vld [vmem:[%s2349_s0 + $0x1b8] sm:$0xff]  ;;  %v1642_v55 = vld [vmem:[%s2349_s0 + $0x1b0] sm:$0xff] }
  0x5c   :  { %2374 = vst [vmem:[#allocation8_spill] sm:$0xff] %v1637_v54  ;;  %2375 = vst [vmem:[#allocation9_spill] sm:$0xff] %v1642_v55 }
  0x5f   :  { %219 = vadd.xlane.f32.xlu1 %v218_v62  ;;  %216 = vadd.xlane.f32.xlu0 %v215_v63  ;;  %v242_v62 = vsel %vm76_vm0, %v1637_v54, 0.0  ;;  %v239_v63 = vsel %vm76_vm0, %v1642_v55, 0.0 }
  0x63   :  { %225 = vadd.xlane.f32.xlu1 %v224_v14  ;;  %222 = vadd.xlane.f32.xlu0 %v221_v15  ;;  %v1651_v14 = vld [vmem:[%s2349_s0 + $0x1c8] sm:$0xff]  ;;  %v1656_v15 = vld [vmem:[%s2349_s0 + $0x1c0] sm:$0xff] }
  0x64   :  { %2376 = vst [vmem:[#allocation10_spill] sm:$0xff] %v1651_v14  ;;  %2377 = vst [vmem:[#allocation11_spill] sm:$0xff] %v1656_v15 }
  0x67   :  { %231 = vadd.xlane.f32.xlu1 %v230_v30  ;;  %228 = vadd.xlane.f32.xlu0 %v227_v31  ;;  %v248_v30 = vsel %vm76_vm0, %v1651_v14, 0.0  ;;  %v245_v31 = vsel %vm76_vm0, %v1656_v15, 0.0  ;;  %v1679_v15 = vld [vmem:[%s2349_s0 + $0x1e8] sm:$0xff]  ;;  %v1684_v14 = vld [vmem:[%s2349_s0 + $0x1e0] sm:$0xff] }
  0x68   :  { %2380 = vst [vmem:[#allocation14_spill] sm:$0xff] %v1679_v15  ;;  %2381 = vst [vmem:[#allocation15_spill] sm:$0xff] %v1684_v14 }
  0x6b   :  { %237 = vadd.xlane.f32.xlu1 %v236_v46  ;;  %234 = vadd.xlane.f32.xlu0 %v233_v47  ;;  %v1665_v46 = vld [vmem:[%s2349_s0 + $0x1d8] sm:$0xff]  ;;  %v1670_v47 = vld [vmem:[%s2349_s0 + $0x1d0] sm:$0xff] }
  0x6c   :  { %2378 = vst [vmem:[#allocation12_spill] sm:$0xff] %v1665_v46  ;;  %2379 = vst [vmem:[#allocation13_spill] sm:$0xff] %v1670_v47 }
  0x6f   :  { %243 = vadd.xlane.f32.xlu1 %v242_v62  ;;  %240 = vadd.xlane.f32.xlu0 %v239_v63  ;;  %v254_v62 = vsel %vm76_vm0, %v1665_v46, 0.0  ;;  %v251_v63 = vsel %vm76_vm0, %v1670_v47, 0.0  ;;  %v1693_v47 = vld [vmem:[%s2349_s0 + $0x1f8] sm:$0xff]  ;;  %v1698_v46 = vld [vmem:[%s2349_s0 + $0x1f0] sm:$0xff] }
  0x70   :  { %2382 = vst [vmem:[#allocation16_spill] sm:$0xff] %v1693_v47  ;;  %2383 = vst [vmem:[#allocation17_spill] sm:$0xff] %v1698_v46 }
  0x73   :  { %249 = vadd.xlane.f32.xlu1 %v248_v30  ;;  %246 = vadd.xlane.f32.xlu0 %v245_v31  ;;  %v260_v30 = vsel %vm76_vm0, %v1679_v15, 0.0  ;;  %v257_v31 = vsel %vm76_vm0, %v1684_v14, 0.0 }
  0x77   :  { %255 = vadd.xlane.f32.xlu1 %v254_v62  ;;  %252 = vadd.xlane.f32.xlu0 %v251_v63  ;;  %v266_v62 = vsel %vm76_vm0, %v1693_v47, 0.0  ;;  %v263_v63 = vsel %vm76_vm0, %v1698_v46, 0.0 }
  0x7b   :  { %261 = vadd.xlane.f32.xlu1 %v260_v30  ;;  %258 = vadd.xlane.f32.xlu0 %v257_v31 }
  0x7f   :  { %267 = vadd.xlane.f32.xlu1 %v266_v62  ;;  %264 = vadd.xlane.f32.xlu0 %v263_v63 }
  0x90   :  { %v79_v14 = vpop.xlane.xlu0 %78  ;;  %v85_v15 = vpop.xlane.xlu1 %84 }
  0x91   :  { %v270_v55 = vmul.f32 0.020833334, %v79_v14  ;;  %v272_v54 = vmul.f32 0.020833334, %v85_v15 }
  0x93   :  { %v334_v39 = vsub.f32 %v1259_v0, %v270_v55  ;;  %v336_v38 = vsub.f32 %v1264_v1, %v272_v54 }
  0x94   :  { %v82_v23 = vpop.xlane.xlu0 %81  ;;  %v88_v22 = vpop.xlane.xlu1 %87 }
  0x95   :  { %v271_v30 = vmul.f32 0.020833334, %v82_v23  ;;  %v273_v31 = vmul.f32 0.020833334, %v88_v22  ;;  %v398_v7 = vmul.f32 %v334_v39, %v334_v39  ;;  %v400_v6 = vmul.f32 %v336_v38, %v336_v38 }
  0x97   :  { %v462_v47 = vsel %vm76_vm0, %v398_v7, 0.0  ;;  %v335_v46 = vsub.f32 %v1269_v2, %v271_v30  ;;  %v337_v62 = vsub.f32 %v1278_v5, %v273_v31  ;;  %v468_v14 = vsel %vm76_vm0, %v400_v6, 0.0 }
  0x98   :  { %463 = vadd.xlane.f32.xlu0 %v462_v47  ;;  %v94_v63 = vpop.xlane.xlu1 %93  ;;  %v91_v15 = vpop.xlane.xlu0 %90 }
  0x99   :  { %v275_v0 = vmul.f32 0.020833334, %v94_v63  ;;  %v399_v55 = vmul.f32 %v335_v46, %v335_v46  ;;  %v274_v1 = vmul.f32 0.020833334, %v91_v15  ;;  %v401_v54 = vmul.f32 %v337_v62, %v337_v62 }
  0x9b   :  { %v465_v23 = vsel %vm76_vm0, %v399_v55, 0.0  ;;  %v339_v22 = vsub.f32 %v1287_v8, %v275_v0  ;;  %v338_v38 = vsub.f32 %v1292_v9, %v274_v1  ;;  %v471_v5 = vsel %vm76_vm0, %v401_v54, 0.0 }
  0x9c   :  { %469 = vadd.xlane.f32.xlu0 %v468_v14  ;;  %466 = vadd.xlane.f32.xlu1 %v465_v23  ;;  %v100_v2 = vpop.xlane.xlu1 %99  ;;  %v97_v7 = vpop.xlane.xlu0 %96 }
  0x9d   :  { %v277_v39 = vmul.f32 0.020833334, %v100_v2  ;;  %v276_v47 = vmul.f32 0.020833334, %v97_v7  ;;  %v403_v6 = vmul.f32 %v339_v22, %v339_v22  ;;  %v402_v30 = vmul.f32 %v338_v38, %v338_v38 }
  0x9f   :  { %v474_v46 = vsel %vm76_vm0, %v402_v30, 0.0  ;;  %v341_v31 = vsub.f32 %v1301_v12, %v277_v39  ;;  %v340_v62 = vsub.f32 %v1306_v13, %v276_v47  ;;  %v477_v9 = vsel %vm76_vm0, %v403_v6, 0.0 }
  0xa0   :  { %472 = vadd.xlane.f32.xlu1 %v471_v5  ;;  %v106_v8 = vpop.xlane.xlu1 %105  ;;  %475 = vadd.xlane.f32.xlu0 %v474_v46  ;;  %v103_v63 = vpop.xlane.xlu0 %102 }
  0xa1   :  { %v279_v14 = vmul.f32 0.020833334, %v106_v8  ;;  %v278_v15 = vmul.f32 0.020833334, %v103_v63  ;;  %v405_v0 = vmul.f32 %v341_v31, %v341_v31  ;;  %v404_v55 = vmul.f32 %v340_v62, %v340_v62 }
  0xa3   :  { %v480_v1 = vsel %vm76_vm0, %v404_v55, 0.0  ;;  %v343_v54 = vsub.f32 %v1315_v16, %v279_v14  ;;  %v342_v23 = vsub.f32 %v1320_v17, %v278_v15  ;;  %v483_v13 = vsel %vm76_vm0, %v405_v0, 0.0 }
  0xa4   :  { %478 = vadd.xlane.f32.xlu1 %v477_v9  ;;  %v112_v12 = vpop.xlane.xlu1 %111  ;;  %481 = vadd.xlane.f32.xlu0 %v480_v1  ;;  %v109_v22 = vpop.xlane.xlu0 %108 }
  0xa5   :  { %v281_v38 = vmul.f32 0.020833334, %v112_v12  ;;  %v280_v2 = vmul.f32 0.020833334, %v109_v22  ;;  %v407_v5 = vmul.f32 %v343_v54, %v343_v54  ;;  %v406_v7 = vmul.f32 %v342_v23, %v342_v23 }
  0xa7   :  { %v486_v39 = vsel %vm76_vm0, %v406_v7, 0.0  ;;  %v345_v47 = vsub.f32 %v1329_v20, %v281_v38  ;;  %v344_v6 = vsub.f32 %v1334_v21, %v280_v2  ;;  %v489_v17 = vsel %vm76_vm0, %v407_v5, 0.0 }
  0xa8   :  { %484 = vadd.xlane.f32.xlu1 %v483_v13  ;;  %v118_v16 = vpop.xlane.xlu1 %117  ;;  %487 = vadd.xlane.f32.xlu0 %v486_v39  ;;  %v115_v30 = vpop.xlane.xlu0 %114 }
  0xa9   :  { %v283_v46 = vmul.f32 0.020833334, %v118_v16  ;;  %v282_v31 = vmul.f32 0.020833334, %v115_v30  ;;  %v409_v62 = vmul.f32 %v345_v47, %v345_v47  ;;  %v408_v8 = vmul.f32 %v344_v6, %v344_v6 }
  0xab   :  { %v492_v9 = vsel %vm76_vm0, %v408_v8, 0.0  ;;  %v347_v63 = vsub.f32 %v1343_v24, %v283_v46  ;;  %v346_v14 = vsub.f32 %v1348_v25, %v282_v31  ;;  %v495_v21 = vsel %vm76_vm0, %v409_v62, 0.0 }
  0xac   :  { %490 = vadd.xlane.f32.xlu1 %v489_v17  ;;  %v124_v20 = vpop.xlane.xlu1 %123  ;;  %493 = vadd.xlane.f32.xlu0 %v492_v9  ;;  %v121_v15 = vpop.xlane.xlu0 %120 }
  0xad   :  { %v285_v0 = vmul.f32 0.020833334, %v124_v20  ;;  %v284_v55 = vmul.f32 0.020833334, %v121_v15  ;;  %v411_v1 = vmul.f32 %v347_v63, %v347_v63  ;;  %v410_v54 = vmul.f32 %v346_v14, %v346_v14 }
  0xaf   :  { %v498_v23 = vsel %vm76_vm0, %v410_v54, 0.0  ;;  %v349_v12 = vsub.f32 %v1357_v28, %v285_v0  ;;  %v348_v13 = vsub.f32 %v1362_v29, %v284_v55  ;;  %v501_v25 = vsel %vm76_vm0, %v411_v1, 0.0 }
  0xb0   :  { %496 = vadd.xlane.f32.xlu1 %v495_v21  ;;  %v130_v24 = vpop.xlane.xlu1 %129  ;;  %499 = vadd.xlane.f32.xlu0 %v498_v23  ;;  %v127_v22 = vpop.xlane.xlu0 %126 }
  0xb1   :  { %v287_v38 = vmul.f32 0.020833334, %v130_v24  ;;  %v286_v2 = vmul.f32 0.020833334, %v127_v22  ;;  %v413_v5 = vmul.f32 %v349_v12, %v349_v12  ;;  %v412_v7 = vmul.f32 %v348_v13, %v348_v13 }
  0xb3   :  { %v504_v39 = vsel %vm76_vm0, %v412_v7, 0.0  ;;  %v351_v47 = vsub.f32 %v1371_v32, %v287_v38  ;;  %v350_v6 = vsub.f32 %v1376_v33, %v286_v2  ;;  %v507_v29 = vsel %vm76_vm0, %v413_v5, 0.0 }
  0xb4   :  { %502 = vadd.xlane.f32.xlu1 %v501_v25  ;;  %v136_v28 = vpop.xlane.xlu1 %135  ;;  %505 = vadd.xlane.f32.xlu0 %v504_v39  ;;  %v133_v16 = vpop.xlane.xlu0 %132 }
  0xb5   :  { %v289_v17 = vmul.f32 0.020833334, %v136_v28  ;;  %v288_v30 = vmul.f32 0.020833334, %v133_v16  ;;  %v415_v46 = vmul.f32 %v351_v47, %v351_v47  ;;  %v414_v31 = vmul.f32 %v350_v6, %v350_v6 }
  0xb7   :  { %v510_v62 = vsel %vm76_vm0, %v414_v31, 0.0  ;;  %v353_v8 = vsub.f32 %v1385_v36, %v289_v17  ;;  %v352_v9 = vsub.f32 %v1390_v37, %v288_v30  ;;  %v513_v33 = vsel %vm76_vm0, %v415_v46, 0.0 }
  0xb8   :  { %508 = vadd.xlane.f32.xlu1 %v507_v29  ;;  %v142_v32 = vpop.xlane.xlu1 %141  ;;  %511 = vadd.xlane.f32.xlu0 %v510_v62  ;;  %v139_v63 = vpop.xlane.xlu0 %138 }
  0xb9   :  { %v291_v14 = vmul.f32 0.020833334, %v142_v32  ;;  %v290_v20 = vmul.f32 0.020833334, %v139_v63  ;;  %v417_v21 = vmul.f32 %v353_v8, %v353_v8  ;;  %v416_v15 = vmul.f32 %v352_v9, %v352_v9 }
  0xbb   :  { %v516_v0 = vsel %vm76_vm0, %v416_v15, 0.0  ;;  %v355_v55 = vsub.f32 %v1399_v40, %v291_v14  ;;  %v354_v1 = vsub.f32 %v1404_v41, %v290_v20  ;;  %v519_v37 = vsel %vm76_vm0, %v417_v21, 0.0 }
  0xbc   :  { %514 = vadd.xlane.f32.xlu1 %v513_v33  ;;  %v148_v36 = vpop.xlane.xlu1 %147  ;;  %517 = vadd.xlane.f32.xlu0 %v516_v0  ;;  %v145_v54 = vpop.xlane.xlu0 %144 }
  0xbd   :  { %v293_v23 = vmul.f32 0.020833334, %v148_v36  ;;  %v292_v12 = vmul.f32 0.020833334, %v145_v54  ;;  %v419_v13 = vmul.f32 %v355_v55, %v355_v55  ;;  %v418_v24 = vmul.f32 %v354_v1, %v354_v1 }
  0xbf   :  { %v522_v25 = vsel %vm76_vm0, %v418_v24, 0.0  ;;  %v357_v22 = vsub.f32 %v1413_v44, %v293_v23  ;;  %v356_v38 = vsub.f32 %v1418_v45, %v292_v12  ;;  %v525_v41 = vsel %vm76_vm0, %v419_v13, 0.0 }
  0xc0   :  { %520 = vadd.xlane.f32.xlu1 %v519_v37  ;;  %v154_v40 = vpop.xlane.xlu1 %153  ;;  %523 = vadd.xlane.f32.xlu0 %v522_v25  ;;  %v151_v2 = vpop.xlane.xlu0 %150 }
  0xc1   :  { %v295_v5 = vmul.f32 0.020833334, %v154_v40  ;;  %v294_v7 = vmul.f32 0.020833334, %v151_v2  ;;  %v421_v39 = vmul.f32 %v357_v22, %v357_v22  ;;  %v420_v47 = vmul.f32 %v356_v38, %v356_v38 }
  0xc3   :  { %v528_v6 = vsel %vm76_vm0, %v420_v47, 0.0  ;;  %v359_v28 = vsub.f32 %v1427_v48, %v295_v5  ;;  %v358_v29 = vsub.f32 %v1432_v49, %v294_v7  ;;  %v531_v45 = vsel %vm76_vm0, %v421_v39, 0.0 }
  0xc4   :  { %526 = vadd.xlane.f32.xlu1 %v525_v41  ;;  %v160_v44 = vpop.xlane.xlu1 %159  ;;  %529 = vadd.xlane.f32.xlu0 %v528_v6  ;;  %v157_v16 = vpop.xlane.xlu0 %156 }
  0xc5   :  { %v297_v17 = vmul.f32 0.020833334, %v160_v44  ;;  %v296_v30 = vmul.f32 0.020833334, %v157_v16  ;;  %v423_v46 = vmul.f32 %v359_v28, %v359_v28  ;;  %v422_v31 = vmul.f32 %v358_v29, %v358_v29 }
  0xc7   :  { %v534_v62 = vsel %vm76_vm0, %v422_v31, 0.0  ;;  %v361_v8 = vsub.f32 %v1441_v52, %v297_v17  ;;  %v360_v9 = vsub.f32 %v1446_v53, %v296_v30  ;;  %v537_v49 = vsel %vm76_vm0, %v423_v46, 0.0 }
  0xc8   :  { %532 = vadd.xlane.f32.xlu1 %v531_v45  ;;  %v166_v48 = vpop.xlane.xlu1 %165  ;;  %535 = vadd.xlane.f32.xlu0 %v534_v62  ;;  %v163_v32 = vpop.xlane.xlu0 %162 }
  0xc9   :  { %v299_v33 = vmul.f32 0.020833334, %v166_v48  ;;  %v298_v63 = vmul.f32 0.020833334, %v163_v32  ;;  %v425_v14 = vmul.f32 %v361_v8, %v361_v8  ;;  %v424_v20 = vmul.f32 %v360_v9, %v360_v9 }
  0xcb   :  { %v540_v21 = vsel %vm76_vm0, %v424_v20, 0.0  ;;  %v363_v15 = vsub.f32 %v1455_v56, %v299_v33  ;;  %v362_v0 = vsub.f32 %v1460_v57, %v298_v63  ;;  %v543_v53 = vsel %vm76_vm0, %v425_v14, 0.0 }
  0xcc   :  { %538 = vadd.xlane.f32.xlu1 %v537_v49  ;;  %v172_v52 = vpop.xlane.xlu1 %171  ;;  %541 = vadd.xlane.f32.xlu0 %v540_v21  ;;  %v169_v55 = vpop.xlane.xlu0 %168 }
  0xcd   :  { %v301_v1 = vmul.f32 0.020833334, %v172_v52  ;;  %v300_v36 = vmul.f32 0.020833334, %v169_v55  ;;  %v427_v37 = vmul.f32 %v363_v15, %v363_v15  ;;  %v426_v54 = vmul.f32 %v362_v0, %v362_v0 }
  0xcf   :  { %v365_v23 = vsub.f32 %v1469_v60, %v301_v1  ;;  %v364_v12 = vsub.f32 %v1474_v61, %v300_v36  ;;  %v546_v13 = vsel %vm76_vm0, %v426_v54, 0.0  ;;  %v549_v57 = vsel %vm76_vm0, %v427_v37, 0.0 }
  0xd0   :  { %544 = vadd.xlane.f32.xlu1 %v543_v53  ;;  %v178_v56 = vpop.xlane.xlu1 %177  ;;  %547 = vadd.xlane.f32.xlu0 %v546_v13  ;;  %v175_v24 = vpop.xlane.xlu0 %174 }
  0xd1   :  { %v303_v25 = vmul.f32 0.020833334, %v178_v56  ;;  %v302_v22 = vmul.f32 0.020833334, %v175_v24  ;;  %v429_v38 = vmul.f32 %v365_v23, %v365_v23  ;;  %v428_v40 = vmul.f32 %v364_v12, %v364_v12 }
  0xd3   :  { %v367_v41 = vsub.f32 %v1483_v3, %v303_v25  ;;  %v366_v2 = vsub.f32 %v1488_v4, %v302_v22  ;;  %v552_v60 = vsel %vm76_vm0, %v428_v40, 0.0  ;;  %v555_v5 = vsel %vm76_vm0, %v429_v38, 0.0 }
  0xd4   :  { %550 = vadd.xlane.f32.xlu1 %v549_v57  ;;  %v184_v61 = vpop.xlane.xlu1 %183  ;;  %553 = vadd.xlane.f32.xlu0 %v552_v60  ;;  %v181_v7 = vpop.xlane.xlu0 %180 }
  0xd5   :  { %v305_v39 = vmul.f32 0.020833334, %v184_v61  ;;  %v304_v47 = vmul.f32 0.020833334, %v181_v7  ;;  %v431_v6 = vmul.f32 %v367_v41, %v367_v41  ;;  %v430_v28 = vmul.f32 %v366_v2, %v366_v2 }
  0xd7   :  { %v369_v29 = vsub.f32 %v1497_v10, %v305_v39  ;;  %v368_v44 = vsub.f32 %v1502_v11, %v304_v47  ;;  %v558_v3 = vsel %vm76_vm0, %v430_v28, 0.0  ;;  %v561_v45 = vsel %vm76_vm0, %v431_v6, 0.0 }
  0xd8   :  { %556 = vadd.xlane.f32.xlu1 %v555_v5  ;;  %v190_v4 = vpop.xlane.xlu1 %189  ;;  %559 = vadd.xlane.f32.xlu0 %v558_v3  ;;  %v187_v16 = vpop.xlane.xlu0 %186 }
  0xd9   :  { %v433_v17 = vmul.f32 %v369_v29, %v369_v29  ;;  %v432_v30 = vmul.f32 %v368_v44, %v368_v44  ;;  %v307_v46 = vmul.f32 0.020833334, %v190_v4  ;;  %v306_v31 = vmul.f32 0.020833334, %v187_v16 }
  0xdb   :  { %v371_v62 = vsub.f32 %v1511_v18, %v307_v46  ;;  %v370_v8 = vsub.f32 %v1516_v19, %v306_v31  ;;  %v564_v10 = vsel %vm76_vm0, %v432_v30, 0.0  ;;  %v567_v9 = vsel %vm76_vm0, %v433_v17, 0.0  ;;  %v2384_v46 = vld [vmem:[#allocation2_spill] sm:$0xff] }
  0xdc   :  { %562 = vadd.xlane.f32.xlu1 %v561_v45  ;;  %v196_v11 = vpop.xlane.xlu1 %195  ;;  %565 = vadd.xlane.f32.xlu0 %v564_v10  ;;  %v193_v48 = vpop.xlane.xlu0 %192 }
  0xdd   :  { %v435_v49 = vmul.f32 %v371_v62, %v371_v62  ;;  %v434_v32 = vmul.f32 %v370_v8, %v370_v8  ;;  %v309_v33 = vmul.f32 0.020833334, %v196_v11  ;;  %v308_v63 = vmul.f32 0.020833334, %v193_v48  ;;  %v2385_v62 = vld [vmem:[#allocation3_spill] sm:$0xff] }
  0xdf   :  { %v373_v14 = vsub.f32 %v1525_v26, %v309_v33  ;;  %v372_v20 = vsub.f32 %v1530_v27, %v308_v63  ;;  %v570_v18 = vsel %vm76_vm0, %v434_v32, 0.0  ;;  %v573_v21 = vsel %vm76_vm0, %v435_v49, 0.0  ;;  %v2386_v33 = vld [vmem:[#allocation4_spill] sm:$0xff] }
  0xe0   :  { %568 = vadd.xlane.f32.xlu1 %v567_v9  ;;  %v202_v19 = vpop.xlane.xlu1 %201  ;;  %571 = vadd.xlane.f32.xlu0 %v570_v18  ;;  %v199_v15 = vpop.xlane.xlu0 %198 }
  0xe1   :  { %v437_v0 = vmul.f32 %v373_v14, %v373_v14  ;;  %v436_v52 = vmul.f32 %v372_v20, %v372_v20  ;;  %v311_v53 = vmul.f32 0.020833334, %v202_v19  ;;  %v310_v55 = vmul.f32 0.020833334, %v199_v15  ;;  %v2387_v14 = vld [vmem:[#allocation5_spill] sm:$0xff] }
  0xe3   :  { %v375_v1 = vsub.f32 %v1539_v34, %v311_v53  ;;  %v374_v36 = vsub.f32 %v1544_v35, %v310_v55  ;;  %v576_v26 = vsel %vm76_vm0, %v436_v52, 0.0  ;;  %v579_v37 = vsel %vm76_vm0, %v437_v0, 0.0 }
  0xe4   :  { %574 = vadd.xlane.f32.xlu1 %v573_v21  ;;  %v208_v27 = vpop.xlane.xlu1 %207  ;;  %577 = vadd.xlane.f32.xlu0 %v576_v26  ;;  %v205_v54 = vpop.xlane.xlu0 %204  ;;  %v2389_v26 = vld [vmem:[#allocation7_spill] sm:$0xff] }
  0xe5   :  { %v439_v23 = vmul.f32 %v375_v1, %v375_v1  ;;  %v438_v12 = vmul.f32 %v374_v36, %v374_v36  ;;  %v313_v13 = vmul.f32 0.020833334, %v208_v27  ;;  %v312_v56 = vmul.f32 0.020833334, %v205_v54  ;;  %v2388_v1 = vld [vmem:[#allocation6_spill] sm:$0xff] }
  0xe7   :  { %v377_v57 = vsub.f32 %v1553_v42, %v313_v13  ;;  %v376_v24 = vsub.f32 %v1558_v43, %v312_v56  ;;  %v582_v34 = vsel %vm76_vm0, %v438_v12, 0.0  ;;  %v585_v25 = vsel %vm76_vm0, %v439_v23, 0.0 }
  0xe8   :  { %580 = vadd.xlane.f32.xlu1 %v579_v37  ;;  %v214_v35 = vpop.xlane.xlu1 %213  ;;  %583 = vadd.xlane.f32.xlu0 %v582_v34  ;;  %v211_v22 = vpop.xlane.xlu0 %210  ;;  %v2390_v34 = vld [vmem:[#allocation8_spill] sm:$0xff] }
  0xe9   :  { %v441_v38 = vmul.f32 %v377_v57, %v377_v57  ;;  %v440_v40 = vmul.f32 %v376_v24, %v376_v24  ;;  %v315_v41 = vmul.f32 0.020833334, %v214_v35  ;;  %v314_v2 = vmul.f32 0.020833334, %v211_v22 }
  0xeb   :  { %v379_v60 = vsub.f32 %v1567_v50, %v315_v41  ;;  %v378_v61 = vsub.f32 %v1572_v51, %v314_v2  ;;  %v588_v42 = vsel %vm76_vm0, %v440_v40, 0.0  ;;  %v591_v5 = vsel %vm76_vm0, %v441_v38, 0.0 }
  0xec   :  { %586 = vadd.xlane.f32.xlu1 %v585_v25  ;;  %v220_v43 = vpop.xlane.xlu1 %219  ;;  %589 = vadd.xlane.f32.xlu0 %v588_v42  ;;  %v217_v7 = vpop.xlane.xlu0 %216  ;;  %v2391_v25 = vld [vmem:[#allocation9_spill] sm:$0xff] }
  0xed   :  { %v443_v39 = vmul.f32 %v379_v60, %v379_v60  ;;  %v442_v47 = vmul.f32 %v378_v61, %v378_v61  ;;  %v317_v6 = vmul.f32 0.020833334, %v220_v43  ;;  %v316_v28 = vmul.f32 0.020833334, %v217_v7 }
  0xef   :  { %v381_v29 = vsub.f32 %v1581_v58, %v317_v6  ;;  %v380_v44 = vsub.f32 %v1586_v59, %v316_v28  ;;  %v594_v50 = vsel %vm76_vm0, %v442_v47, 0.0  ;;  %v597_v3 = vsel %vm76_vm0, %v443_v39, 0.0  ;;  %v2393_v39 = vld [vmem:[#allocation11_spill] sm:$0xff] }
  0xf0   :  { %592 = vadd.xlane.f32.xlu1 %v591_v5  ;;  %v226_v51 = vpop.xlane.xlu1 %225  ;;  %595 = vadd.xlane.f32.xlu0 %v594_v50  ;;  %v223_v4 = vpop.xlane.xlu0 %222  ;;  %v2392_v5 = vld [vmem:[#allocation10_spill] sm:$0xff] }
  0xf1   :  { %v445_v45 = vmul.f32 %v381_v29, %v381_v29  ;;  %v444_v16 = vmul.f32 %v380_v44, %v380_v44  ;;  %v319_v17 = vmul.f32 0.020833334, %v226_v51  ;;  %v318_v30 = vmul.f32 0.020833334, %v223_v4 }
  0xf3   :  { %v383_v31 = vsub.f32 %v2384_v46, %v319_v17  ;;  %v382_v8 = vsub.f32 %v2385_v62, %v318_v30  ;;  %v600_v58 = vsel %vm76_vm0, %v444_v16, 0.0  ;;  %v603_v10 = vsel %vm76_vm0, %v445_v45, 0.0  ;;  %v2394_v45 = vld [vmem:[#allocation12_spill] sm:$0xff]  ;;  %v2395_v17 = vld [vmem:[#allocation13_spill] sm:$0xff] }
  0xf4   :  { %598 = vadd.xlane.f32.xlu1 %v597_v3  ;;  %v232_v59 = vpop.xlane.xlu1 %231  ;;  %601 = vadd.xlane.f32.xlu0 %v600_v58  ;;  %v229_v11 = vpop.xlane.xlu0 %228 }
  0xf5   :  { %v447_v9 = vmul.f32 %v383_v31, %v383_v31  ;;  %v446_v48 = vmul.f32 %v382_v8, %v382_v8  ;;  %v321_v49 = vmul.f32 0.020833334, %v232_v59  ;;  %v320_v32 = vmul.f32 0.020833334, %v229_v11 }
  0xf7   :  { %v385_v63 = vsub.f32 %v2386_v33, %v321_v49  ;;  %v384_v20 = vsub.f32 %v2387_v14, %v320_v32  ;;  %v606_v18 = vsel %vm76_vm0, %v446_v48, 0.0  ;;  %v609_v21 = vsel %vm76_vm0, %v447_v9, 0.0  ;;  %v2396_v9 = vld [vmem:[#allocation14_spill] sm:$0xff]  ;;  %v2397_v49 = vld [vmem:[#allocation15_spill] sm:$0xff] }
  0xf8   :  { %604 = vadd.xlane.f32.xlu1 %v603_v10  ;;  %v238_v19 = vpop.xlane.xlu1 %237  ;;  %607 = vadd.xlane.f32.xlu0 %v606_v18  ;;  %v235_v15 = vpop.xlane.xlu0 %234 }
  0xf9   :  { %v449_v0 = vmul.f32 %v385_v63, %v385_v63  ;;  %v448_v52 = vmul.f32 %v384_v20, %v384_v20  ;;  %v323_v53 = vmul.f32 0.020833334, %v238_v19  ;;  %v322_v55 = vmul.f32 0.020833334, %v235_v15 }
  0xfb   :  { %v387_v36 = vsub.f32 %v2388_v1, %v323_v53  ;;  %v386_v27 = vsub.f32 %v2389_v26, %v322_v55  ;;  %v612_v37 = vsel %vm76_vm0, %v448_v52, 0.0  ;;  %v615_v23 = vsel %vm76_vm0, %v449_v0, 0.0  ;;  %v2398_v0 = vld [vmem:[#allocation16_spill] sm:$0xff]  ;;  %v2399_v53 = vld [vmem:[#allocation17_spill] sm:$0xff] }
  0xfc   :  { %610 = vadd.xlane.f32.xlu1 %v609_v21  ;;  %v244_v54 = vpop.xlane.xlu1 %243  ;;  %613 = vadd.xlane.f32.xlu0 %v612_v37  ;;  %v241_v12 = vpop.xlane.xlu0 %240 }
  0xfd   :  { %v451_v13 = vmul.f32 %v387_v36, %v387_v36  ;;  %v450_v56 = vmul.f32 %v386_v27, %v386_v27  ;;  %v325_v57 = vmul.f32 0.020833334, %v244_v54  ;;  %v324_v24 = vmul.f32 0.020833334, %v241_v12 }
  0xff   :  { %v389_v35 = vsub.f32 %v2390_v34, %v325_v57  ;;  %v388_v22 = vsub.f32 %v2391_v25, %v324_v24  ;;  %v618_v38 = vsel %vm76_vm0, %v450_v56, 0.0  ;;  %v621_v41 = vsel %vm76_vm0, %v451_v13, 0.0 }
 0x100   :  { %616 = vadd.xlane.f32.xlu1 %v615_v23  ;;  %v250_v40 = vpop.xlane.xlu1 %249  ;;  %619 = vadd.xlane.f32.xlu0 %v618_v38  ;;  %v247_v2 = vpop.xlane.xlu0 %246 }
 0x101   :  { %v453_v60 = vmul.f32 %v389_v35, %v389_v35  ;;  %v452_v61 = vmul.f32 %v388_v22, %v388_v22  ;;  %v327_v42 = vmul.f32 0.020833334, %v250_v40  ;;  %v326_v43 = vmul.f32 0.020833334, %v247_v2 }
 0x103   :  { %v391_v7 = vsub.f32 %v2392_v5, %v327_v42  ;;  %v390_v47 = vsub.f32 %v2393_v39, %v326_v43  ;;  %v624_v6 = vsel %vm76_vm0, %v452_v61, 0.0  ;;  %v627_v29 = vsel %vm76_vm0, %v453_v60, 0.0  ;;  %v1835_v39 = vld [vmem:[%s2350_s1] ss:$0 sm:$0xff] }
 0x104   :  { %622 = vadd.xlane.f32.xlu1 %v621_v41  ;;  %v256_v28 = vpop.xlane.xlu1 %255  ;;  %625 = vadd.xlane.f32.xlu0 %v624_v6  ;;  %v253_v44 = vpop.xlane.xlu0 %252 }
 0x105   :  { %v455_v50 = vmul.f32 %v391_v7, %v391_v7  ;;  %v454_v51 = vmul.f32 %v390_v47, %v390_v47  ;;  %v329_v3 = vmul.f32 0.020833334, %v256_v28  ;;  %v328_v4 = vmul.f32 0.020833334, %v253_v44  ;;  %v1177_v28 = vld [vmem:[%s2349_s0] sm:$0xff] }
 0x107   :  { %v393_v16 = vsub.f32 %v2394_v45, %v329_v3  ;;  %v392_v30 = vsub.f32 %v2395_v17, %v328_v4  ;;  %v630_v46 = vsel %vm76_vm0, %v454_v51, 0.0  ;;  %v633_v62 = vsel %vm76_vm0, %v455_v50, 0.0 }
 0x108   :  { %628 = vadd.xlane.f32.xlu1 %v627_v29  ;;  %v262_v31 = vpop.xlane.xlu1 %261  ;;  %631 = vadd.xlane.f32.xlu0 %v630_v46  ;;  %v259_v8 = vpop.xlane.xlu0 %258  ;;  %v1178_v46 = vld [vmem:[%s2349_s0 + $0x8] sm:$0xff] }
 0x109   :  { %v457_v58 = vmul.f32 %v393_v16, %v393_v16  ;;  %v456_v59 = vmul.f32 %v392_v30, %v392_v30  ;;  %v331_v10 = vmul.f32 0.020833334, %v262_v31  ;;  %v330_v11 = vmul.f32 0.020833334, %v259_v8 }
 0x10b   :  { %v395_v48 = vsub.f32 %v2396_v9, %v331_v10  ;;  %v394_v32 = vsub.f32 %v2397_v49, %v330_v11  ;;  %v636_v33 = vsel %vm76_vm0, %v456_v59, 0.0  ;;  %v639_v14 = vsel %vm76_vm0, %v457_v58, 0.0  ;;  %v1179_v58 = vld [vmem:[%s2349_s0 + $0x10] sm:$0xff] }
 0x10c   :  { %634 = vadd.xlane.f32.xlu1 %v633_v62  ;;  %v268_v63 = vpop.xlane.xlu1 %267  ;;  %637 = vadd.xlane.f32.xlu0 %v636_v33  ;;  %v265_v20 = vpop.xlane.xlu0 %264 }
 0x10d   :  { %v459_v18 = vmul.f32 %v395_v48, %v395_v48  ;;  %v458_v19 = vmul.f32 %v394_v32, %v394_v32  ;;  %v333_v21 = vmul.f32 0.020833334, %v268_v63  ;;  %v332_v15 = vmul.f32 0.020833334, %v265_v20 }
 0x10f   :  { %v397_v52 = vsub.f32 %v2398_v0, %v333_v21  ;;  %v396_v55 = vsub.f32 %v2399_v53, %v332_v15  ;;  %v642_v1 = vsel %vm76_vm0, %v458_v19, 0.0  ;;  %v645_v27 = vsel %vm76_vm0, %v459_v18, 0.0  ;;  %v1181_v21 = vld [vmem:[%s2349_s0 + $0x20] sm:$0xff] }
 0x110   :  { %640 = vadd.xlane.f32.xlu1 %v639_v14  ;;  %643 = vadd.xlane.f32.xlu0 %v642_v1  ;;  %v1180_v14 = vld [vmem:[%s2349_s0 + $0x18] sm:$0xff] }
 0x111   :  { %v461_v36 = vmul.f32 %v397_v52, %v397_v52  ;;  %v460_v26 = vmul.f32 %v396_v55, %v396_v55 }
 0x113   :  { %v648_v37 = vsel %vm76_vm0, %v460_v26, 0.0  ;;  %v651_v54 = vsel %vm76_vm0, %v461_v36, 0.0 }
 0x114   :  { %646 = vadd.xlane.f32.xlu1 %v645_v27  ;;  %649 = vadd.xlane.f32.xlu0 %v648_v37  ;;  %v1182_v37 = vld [vmem:[%s2349_s0 + $0x28] sm:$0xff] }
 0x118   :  { %652 = vadd.xlane.f32.xlu1 %v651_v54 }
 0x125   :  { %v464_v23 = vpop.xlane.xlu0 %463 }
 0x126   :  { %v654_v12 = vmul.f32 0.020833334, %v464_v23 }
 0x128   :  { %v718_v13 = vadd.f32 1e-05, %v654_v12 }
 0x129   :  { %v467_v56 = vpop.xlane.xlu1 %466  ;;  %v470_v57 = vpop.xlane.xlu0 %469 }
 0x12a   :  { %1049 = vrsqrt.f32 %v718_v13  ;;  %v655_v24 = vmul.f32 0.020833334, %v467_v56  ;;  %v656_v34 = vmul.f32 0.020833334, %v470_v57  ;;  %v1183_v13 = vld [vmem:[%s2349_s0 + $0x30] sm:$0xff] }
 0x12c   :  { %v719_v35 = vadd.f32 1e-05, %v655_v24  ;;  %v720_v25 = vadd.f32 1e-05, %v656_v34 }
 0x12d   :  { %v473_v22 = vpop.xlane.xlu1 %472  ;;  %v476_v38 = vpop.xlane.xlu0 %475 }
 0x12e   :  { %1051 = vrsqrt.f32 %v719_v35  ;;  %v657_v40 = vmul.f32 0.020833334, %v473_v22  ;;  %v658_v41 = vmul.f32 0.020833334, %v476_v38 }
 0x12f   :  { %1053 = vrsqrt.f32 %v720_v25 }
 0x130   :  { %v721_v2 = vadd.f32 1e-05, %v657_v40  ;;  %v722_v60 = vadd.f32 1e-05, %v658_v41  ;;  %v1184_v41 = vld [vmem:[%s2349_s0 + $0x38] sm:$0xff] }
 0x131   :  { %v479_v61 = vpop.xlane.xlu1 %478  ;;  %v482_v42 = vpop.xlane.xlu0 %481 }
 0x132   :  { %1055 = vrsqrt.f32 %v721_v2  ;;  %v659_v43 = vmul.f32 0.020833334, %v479_v61  ;;  %v660_v5 = vmul.f32 0.020833334, %v482_v42  ;;  %v1185_v42 = vld [vmem:[%s2349_s0 + $0x40] sm:$0xff] }
 0x133   :  { %1057 = vrsqrt.f32 %v722_v60 }
 0x134   :  { %v1050_v7 = vpop.eup %1049  ;;  %v723_v47 = vadd.f32 1e-05, %v659_v43  ;;  %v724_v6 = vadd.f32 1e-05, %v660_v5 }
 0x135   :  { %v846_v29 = vmul.f32 %v1177_v28, %v1050_v7  ;;  %v485_v44 = vpop.xlane.xlu1 %484  ;;  %v488_v50 = vpop.xlane.xlu0 %487 }
 0x136   :  { %1059 = vrsqrt.f32 %v723_v47  ;;  %v661_v51 = vmul.f32 0.020833334, %v485_v44  ;;  %v662_v3 = vmul.f32 0.020833334, %v488_v50 }
 0x137   :  { %v916_v4 = vmul.f32 %v1835_v39, %v846_v29  ;;  %1061 = vrsqrt.f32 %v724_v6 }
 0x138   :  { %v1052_v45 = vpop.eup %1051  ;;  %v725_v16 = vadd.f32 1e-05, %v661_v51  ;;  %v726_v17 = vadd.f32 1e-05, %v662_v3  ;;  %v1186_v51 = vld [vmem:[%s2349_s0 + $0x48] sm:$0xff] }
 0x139   :  { %v1054_v30 = vpop.eup %1053  ;;  %980 = vst.msk [vmem:[%s2351_s2] sm:$0xff] %vm76_vm0, %v916_v4  ;;  %v847_v31 = vmul.f32 %v1178_v46, %v1052_v45  ;;  %v491_v62 = vpop.xlane.xlu1 %490 }
 0x13a   :  { %v494_v8 = vpop.xlane.xlu0 %493  ;;  %v848_v59 = vmul.f32 %v1179_v58, %v1054_v30  ;;  %1063 = vrsqrt.f32 %v725_v16  ;;  %v663_v10 = vmul.f32 0.020833334, %v491_v62  ;;  %v1187_v16 = vld [vmem:[%s2349_s0 + $0x50] sm:$0xff] }
 0x13b   :  { %v664_v11 = vmul.f32 0.020833334, %v494_v8  ;;  %v917_v9 = vmul.f32 %v1835_v39, %v847_v31  ;;  %1065 = vrsqrt.f32 %v726_v17 }
 0x13c   :  { %v1056_v48 = vpop.eup %1055  ;;  %v918_v49 = vmul.f32 %v1835_v39, %v848_v59  ;;  %v727_v32 = vadd.f32 1e-05, %v663_v10 }
 0x13d   :  { %v728_v33 = vadd.f32 1e-05, %v664_v11  ;;  %v1058_v63 = vpop.eup %1057  ;;  %981 = vst.msk [vmem:[%s2351_s2 + $0x8] sm:$0xff] %vm76_vm0, %v917_v9  ;;  %v849_v20 = vmul.f32 %v1180_v14, %v1056_v48  ;;  %v497_v18 = vpop.xlane.xlu1 %496  ;;  %v1188_v11 = vld [vmem:[%s2349_s0 + $0x58] sm:$0xff] }
 0x13e   :  { %v500_v19 = vpop.xlane.xlu0 %499  ;;  %982 = vst.msk [vmem:[%s2351_s2 + $0x10] sm:$0xff] %vm76_vm0, %v918_v49  ;;  %v850_v15 = vmul.f32 %v1181_v21, %v1058_v63  ;;  %1067 = vrsqrt.f32 %v727_v32  ;;  %v665_v0 = vmul.f32 0.020833334, %v497_v18  ;;  %v1189_v32 = vld [vmem:[%s2349_s0 + $0x60] sm:$0xff] }
 0x13f   :  { %v666_v52 = vmul.f32 0.020833334, %v500_v19  ;;  %v919_v53 = vmul.f32 %v1835_v39, %v849_v20  ;;  %1069 = vrsqrt.f32 %v728_v33 }
 0x140   :  { %v1060_v55 = vpop.eup %1059  ;;  %v920_v1 = vmul.f32 %v1835_v39, %v850_v15  ;;  %v729_v36 = vadd.f32 1e-05, %v665_v0 }
 0x141   :  { %v730_v26 = vadd.f32 1e-05, %v666_v52  ;;  %v1062_v27 = vpop.eup %1061  ;;  %983 = vst.msk [vmem:[%s2351_s2 + $0x18] sm:$0xff] %vm76_vm0, %v919_v53  ;;  %v851_v54 = vmul.f32 %v1182_v37, %v1060_v55  ;;  %v503_v23 = vpop.xlane.xlu1 %502  ;;  %v1190_v52 = vld [vmem:[%s2349_s0 + $0x68] sm:$0xff] }
 0x142   :  { %v506_v12 = vpop.xlane.xlu0 %505  ;;  %984 = vst.msk [vmem:[%s2351_s2 + $0x20] sm:$0xff] %vm76_vm0, %v920_v1  ;;  %v852_v56 = vmul.f32 %v1183_v13, %v1062_v27  ;;  %1071 = vrsqrt.f32 %v729_v36  ;;  %v667_v57 = vmul.f32 0.020833334, %v503_v23  ;;  %v1191_v36 = vld [vmem:[%s2349_s0 + $0x70] sm:$0xff] }
 0x143   :  { %v668_v24 = vmul.f32 0.020833334, %v506_v12  ;;  %v921_v34 = vmul.f32 %v1835_v39, %v851_v54  ;;  %1073 = vrsqrt.f32 %v730_v26 }
 0x144   :  { %v1064_v35 = vpop.eup %1063  ;;  %v922_v25 = vmul.f32 %v1835_v39, %v852_v56  ;;  %v731_v22 = vadd.f32 1e-05, %v667_v57 }
 0x145   :  { %v732_v38 = vadd.f32 1e-05, %v668_v24  ;;  %v1066_v40 = vpop.eup %1065  ;;  %985 = vst.msk [vmem:[%s2351_s2 + $0x28] sm:$0xff] %vm76_vm0, %v921_v34  ;;  %v853_v2 = vmul.f32 %v1184_v41, %v1064_v35  ;;  %v509_v60 = vpop.xlane.xlu1 %508  ;;  %v1192_v24 = vld [vmem:[%s2349_s0 + $0x78] sm:$0xff] }
 0x146   :  { %v512_v61 = vpop.xlane.xlu0 %511  ;;  %986 = vst.msk [vmem:[%s2351_s2 + $0x30] sm:$0xff] %vm76_vm0, %v922_v25  ;;  %v854_v43 = vmul.f32 %v1185_v42, %v1066_v40  ;;  %1075 = vrsqrt.f32 %v731_v22  ;;  %v669_v5 = vmul.f32 0.020833334, %v509_v60  ;;  %v1193_v22 = vld [vmem:[%s2349_s0 + $0x80] sm:$0xff] }
 0x147   :  { %v670_v7 = vmul.f32 0.020833334, %v512_v61  ;;  %v923_v47 = vmul.f32 %v1835_v39, %v853_v2  ;;  %1077 = vrsqrt.f32 %v732_v38 }
 0x148   :  { %v1068_v6 = vpop.eup %1067  ;;  %v924_v28 = vmul.f32 %v1835_v39, %v854_v43  ;;  %v733_v29 = vadd.f32 1e-05, %v669_v5 }
 0x149   :  { %v734_v44 = vadd.f32 1e-05, %v670_v7  ;;  %v1070_v50 = vpop.eup %1069  ;;  %987 = vst.msk [vmem:[%s2351_s2 + $0x38] sm:$0xff] %vm76_vm0, %v923_v47  ;;  %v855_v3 = vmul.f32 %v1186_v51, %v1068_v6  ;;  %v515_v4 = vpop.xlane.xlu1 %514  ;;  %v1194_v7 = vld [vmem:[%s2349_s0 + $0x88] sm:$0xff] }
 0x14a   :  { %v518_v45 = vpop.xlane.xlu0 %517  ;;  %988 = vst.msk [vmem:[%s2351_s2 + $0x40] sm:$0xff] %vm76_vm0, %v924_v28  ;;  %v856_v17 = vmul.f32 %v1187_v16, %v1070_v50  ;;  %1079 = vrsqrt.f32 %v733_v29  ;;  %v671_v30 = vmul.f32 0.020833334, %v515_v4  ;;  %v1195_v29 = vld [vmem:[%s2349_s0 + $0x90] sm:$0xff] }
 0x14b   :  { %v672_v46 = vmul.f32 0.020833334, %v518_v45  ;;  %v925_v31 = vmul.f32 %v1835_v39, %v855_v3  ;;  %1081 = vrsqrt.f32 %v734_v44 }
 0x14c   :  { %v1072_v62 = vpop.eup %1071  ;;  %v926_v8 = vmul.f32 %v1835_v39, %v856_v17  ;;  %v735_v58 = vadd.f32 1e-05, %v671_v30 }
 0x14d   :  { %v736_v59 = vadd.f32 1e-05, %v672_v46  ;;  %v1074_v10 = vpop.eup %1073  ;;  %989 = vst.msk [vmem:[%s2351_s2 + $0x48] sm:$0xff] %vm76_vm0, %v925_v31  ;;  %v857_v9 = vmul.f32 %v1188_v11, %v1072_v62  ;;  %v521_v48 = vpop.xlane.xlu1 %520  ;;  %v1196_v46 = vld [vmem:[%s2349_s0 + $0x98] sm:$0xff] }
 0x14e   :  { %v524_v49 = vpop.xlane.xlu0 %523  ;;  %990 = vst.msk [vmem:[%s2351_s2 + $0x50] sm:$0xff] %vm76_vm0, %v926_v8  ;;  %v858_v33 = vmul.f32 %v1189_v32, %v1074_v10  ;;  %1083 = vrsqrt.f32 %v735_v58  ;;  %v673_v63 = vmul.f32 0.020833334, %v521_v48  ;;  %v1197_v58 = vld [vmem:[%s2349_s0 + $0xa0] sm:$0xff] }
 0x14f   :  { %v674_v14 = vmul.f32 0.020833334, %v524_v49  ;;  %v927_v20 = vmul.f32 %v1835_v39, %v857_v9  ;;  %1085 = vrsqrt.f32 %v736_v59 }
 0x150   :  { %v1076_v18 = vpop.eup %1075  ;;  %v928_v19 = vmul.f32 %v1835_v39, %v858_v33  ;;  %v737_v21 = vadd.f32 1e-05, %v673_v63 }
 0x151   :  { %v738_v15 = vadd.f32 1e-05, %v674_v14  ;;  %v1078_v0 = vpop.eup %1077  ;;  %991 = vst.msk [vmem:[%s2351_s2 + $0x58] sm:$0xff] %vm76_vm0, %v927_v20  ;;  %v859_v53 = vmul.f32 %v1190_v52, %v1076_v18  ;;  %v527_v55 = vpop.xlane.xlu1 %526  ;;  %v1198_v14 = vld [vmem:[%s2349_s0 + $0xa8] sm:$0xff] }
 0x152   :  { %v530_v1 = vpop.xlane.xlu0 %529  ;;  %992 = vst.msk [vmem:[%s2351_s2 + $0x60] sm:$0xff] %vm76_vm0, %v928_v19  ;;  %v860_v26 = vmul.f32 %v1191_v36, %v1078_v0  ;;  %1087 = vrsqrt.f32 %v737_v21  ;;  %v675_v27 = vmul.f32 0.020833334, %v527_v55  ;;  %v1199_v21 = vld [vmem:[%s2349_s0 + $0xb0] sm:$0xff] }
 0x153   :  { %v676_v37 = vmul.f32 0.020833334, %v530_v1  ;;  %v929_v54 = vmul.f32 %v1835_v39, %v859_v53  ;;  %1089 = vrsqrt.f32 %v738_v15 }
 0x154   :  { %v1080_v23 = vpop.eup %1079  ;;  %v930_v12 = vmul.f32 %v1835_v39, %v860_v26  ;;  %v739_v13 = vadd.f32 1e-05, %v675_v27 }
 0x155   :  { %v740_v56 = vadd.f32 1e-05, %v676_v37  ;;  %v1082_v57 = vpop.eup %1081  ;;  %993 = vst.msk [vmem:[%s2351_s2 + $0x68] sm:$0xff] %vm76_vm0, %v929_v54  ;;  %v861_v34 = vmul.f32 %v1192_v24, %v1080_v23  ;;  %v533_v35 = vpop.xlane.xlu1 %532  ;;  %v1200_v37 = vld [vmem:[%s2349_s0 + $0xb8] sm:$0xff] }
 0x156   :  { %v536_v25 = vpop.xlane.xlu0 %535  ;;  %994 = vst.msk [vmem:[%s2351_s2 + $0x70] sm:$0xff] %vm76_vm0, %v930_v12  ;;  %v862_v38 = vmul.f32 %v1193_v22, %v1082_v57  ;;  %1091 = vrsqrt.f32 %v739_v13  ;;  %v677_v40 = vmul.f32 0.020833334, %v533_v35  ;;  %v1201_v13 = vld [vmem:[%s2349_s0 + $0xc0] sm:$0xff] }
 0x157   :  { %v678_v41 = vmul.f32 0.020833334, %v536_v25  ;;  %v931_v2 = vmul.f32 %v1835_v39, %v861_v34  ;;  %1093 = vrsqrt.f32 %v740_v56 }
 0x158   :  { %v1084_v60 = vpop.eup %1083  ;;  %v932_v61 = vmul.f32 %v1835_v39, %v862_v38  ;;  %v741_v42 = vadd.f32 1e-05, %v677_v40 }
 0x159   :  { %v742_v43 = vadd.f32 1e-05, %v678_v41  ;;  %v1086_v5 = vpop.eup %1085  ;;  %995 = vst.msk [vmem:[%s2351_s2 + $0x78] sm:$0xff] %vm76_vm0, %v931_v2  ;;  %v863_v47 = vmul.f32 %v1194_v7, %v1084_v60  ;;  %v539_v6 = vpop.xlane.xlu1 %538  ;;  %v1202_v41 = vld [vmem:[%s2349_s0 + $0xc8] sm:$0xff] }
 0x15a   :  { %v542_v28 = vpop.xlane.xlu0 %541  ;;  %996 = vst.msk [vmem:[%s2351_s2 + $0x80] sm:$0xff] %vm76_vm0, %v932_v61  ;;  %v864_v44 = vmul.f32 %v1195_v29, %v1086_v5  ;;  %1095 = vrsqrt.f32 %v741_v42  ;;  %v679_v50 = vmul.f32 0.020833334, %v539_v6  ;;  %v1203_v42 = vld [vmem:[%s2349_s0 + $0xd0] sm:$0xff] }
 0x15b   :  { %v680_v51 = vmul.f32 0.020833334, %v542_v28  ;;  %v933_v3 = vmul.f32 %v1835_v39, %v863_v47  ;;  %1097 = vrsqrt.f32 %v742_v43 }
 0x15c   :  { %v1088_v4 = vpop.eup %1087  ;;  %v934_v45 = vmul.f32 %v1835_v39, %v864_v44  ;;  %v743_v16 = vadd.f32 1e-05, %v679_v50 }
 0x15d   :  { %v744_v17 = vadd.f32 1e-05, %v680_v51  ;;  %v1090_v30 = vpop.eup %1089  ;;  %997 = vst.msk [vmem:[%s2351_s2 + $0x88] sm:$0xff] %vm76_vm0, %v933_v3  ;;  %v865_v31 = vmul.f32 %v1196_v46, %v1088_v4  ;;  %v545_v62 = vpop.xlane.xlu1 %544  ;;  %v1204_v51 = vld [vmem:[%s2349_s0 + $0xd8] sm:$0xff] }
 0x15e   :  { %v548_v8 = vpop.xlane.xlu0 %547  ;;  %998 = vst.msk [vmem:[%s2351_s2 + $0x90] sm:$0xff] %vm76_vm0, %v934_v45  ;;  %v866_v59 = vmul.f32 %v1197_v58, %v1090_v30  ;;  %1099 = vrsqrt.f32 %v743_v16  ;;  %v681_v10 = vmul.f32 0.020833334, %v545_v62  ;;  %v1205_v16 = vld [vmem:[%s2349_s0 + $0xe0] sm:$0xff] }
 0x15f   :  { %v682_v11 = vmul.f32 0.020833334, %v548_v8  ;;  %v935_v9 = vmul.f32 %v1835_v39, %v865_v31  ;;  %1101 = vrsqrt.f32 %v744_v17 }
 0x160   :  { %v1092_v48 = vpop.eup %1091  ;;  %v936_v49 = vmul.f32 %v1835_v39, %v866_v59  ;;  %v745_v32 = vadd.f32 1e-05, %v681_v10 }
 0x161   :  { %v746_v33 = vadd.f32 1e-05, %v682_v11  ;;  %v1094_v63 = vpop.eup %1093  ;;  %999 = vst.msk [vmem:[%s2351_s2 + $0x98] sm:$0xff] %vm76_vm0, %v935_v9  ;;  %v867_v20 = vmul.f32 %v1198_v14, %v1092_v48  ;;  %v551_v18 = vpop.xlane.xlu1 %550  ;;  %v1206_v11 = vld [vmem:[%s2349_s0 + $0xe8] sm:$0xff] }
 0x162   :  { %v554_v19 = vpop.xlane.xlu0 %553  ;;  %1000 = vst.msk [vmem:[%s2351_s2 + $0xa0] sm:$0xff] %vm76_vm0, %v936_v49  ;;  %v868_v15 = vmul.f32 %v1199_v21, %v1094_v63  ;;  %1103 = vrsqrt.f32 %v745_v32  ;;  %v683_v0 = vmul.f32 0.020833334, %v551_v18  ;;  %v1207_v32 = vld [vmem:[%s2349_s0 + $0xf0] sm:$0xff] }
 0x163   :  { %v684_v52 = vmul.f32 0.020833334, %v554_v19  ;;  %v937_v53 = vmul.f32 %v1835_v39, %v867_v20  ;;  %1105 = vrsqrt.f32 %v746_v33 }
 0x164   :  { %v1096_v55 = vpop.eup %1095  ;;  %v938_v1 = vmul.f32 %v1835_v39, %v868_v15  ;;  %v747_v36 = vadd.f32 1e-05, %v683_v0 }
 0x165   :  { %v748_v26 = vadd.f32 1e-05, %v684_v52  ;;  %v1098_v27 = vpop.eup %1097  ;;  %1001 = vst.msk [vmem:[%s2351_s2 + $0xa8] sm:$0xff] %vm76_vm0, %v937_v53  ;;  %v869_v54 = vmul.f32 %v1200_v37, %v1096_v55  ;;  %v557_v23 = vpop.xlane.xlu1 %556  ;;  %v1208_v52 = vld [vmem:[%s2349_s0 + $0xf8] sm:$0xff] }
 0x166   :  { %v560_v12 = vpop.xlane.xlu0 %559  ;;  %1002 = vst.msk [vmem:[%s2351_s2 + $0xb0] sm:$0xff] %vm76_vm0, %v938_v1  ;;  %v870_v56 = vmul.f32 %v1201_v13, %v1098_v27  ;;  %1107 = vrsqrt.f32 %v747_v36  ;;  %v685_v57 = vmul.f32 0.020833334, %v557_v23  ;;  %v1209_v36 = vld [vmem:[%s2349_s0 + $0x100] sm:$0xff] }
 0x167   :  { %v686_v24 = vmul.f32 0.020833334, %v560_v12  ;;  %v939_v34 = vmul.f32 %v1835_v39, %v869_v54  ;;  %1109 = vrsqrt.f32 %v748_v26 }
 0x168   :  { %v1100_v35 = vpop.eup %1099  ;;  %v940_v25 = vmul.f32 %v1835_v39, %v870_v56  ;;  %v749_v22 = vadd.f32 1e-05, %v685_v57 }
 0x169   :  { %v750_v38 = vadd.f32 1e-05, %v686_v24  ;;  %v1102_v40 = vpop.eup %1101  ;;  %1003 = vst.msk [vmem:[%s2351_s2 + $0xb8] sm:$0xff] %vm76_vm0, %v939_v34  ;;  %v871_v2 = vmul.f32 %v1202_v41, %v1100_v35  ;;  %v563_v60 = vpop.xlane.xlu1 %562  ;;  %v1210_v24 = vld [vmem:[%s2349_s0 + $0x108] sm:$0xff] }
 0x16a   :  { %v566_v61 = vpop.xlane.xlu0 %565  ;;  %1004 = vst.msk [vmem:[%s2351_s2 + $0xc0] sm:$0xff] %vm76_vm0, %v940_v25  ;;  %v872_v43 = vmul.f32 %v1203_v42, %v1102_v40  ;;  %1111 = vrsqrt.f32 %v749_v22  ;;  %v687_v5 = vmul.f32 0.020833334, %v563_v60  ;;  %v1211_v22 = vld [vmem:[%s2349_s0 + $0x110] sm:$0xff] }
 0x16b   :  { %v688_v7 = vmul.f32 0.020833334, %v566_v61  ;;  %v941_v47 = vmul.f32 %v1835_v39, %v871_v2  ;;  %1113 = vrsqrt.f32 %v750_v38 }
 0x16c   :  { %v1104_v6 = vpop.eup %1103  ;;  %v942_v28 = vmul.f32 %v1835_v39, %v872_v43  ;;  %v751_v29 = vadd.f32 1e-05, %v687_v5 }
 0x16d   :  { %v752_v44 = vadd.f32 1e-05, %v688_v7  ;;  %v1106_v50 = vpop.eup %1105  ;;  %1005 = vst.msk [vmem:[%s2351_s2 + $0xc8] sm:$0xff] %vm76_vm0, %v941_v47  ;;  %v873_v3 = vmul.f32 %v1204_v51, %v1104_v6  ;;  %v569_v4 = vpop.xlane.xlu1 %568  ;;  %v1212_v7 = vld [vmem:[%s2349_s0 + $0x118] sm:$0xff] }
 0x16e   :  { %v572_v45 = vpop.xlane.xlu0 %571  ;;  %1006 = vst.msk [vmem:[%s2351_s2 + $0xd0] sm:$0xff] %vm76_vm0, %v942_v28  ;;  %v874_v17 = vmul.f32 %v1205_v16, %v1106_v50  ;;  %1115 = vrsqrt.f32 %v751_v29  ;;  %v689_v30 = vmul.f32 0.020833334, %v569_v4  ;;  %v1213_v29 = vld [vmem:[%s2349_s0 + $0x120] sm:$0xff] }
 0x16f   :  { %v690_v46 = vmul.f32 0.020833334, %v572_v45  ;;  %v943_v31 = vmul.f32 %v1835_v39, %v873_v3  ;;  %1117 = vrsqrt.f32 %v752_v44 }
 0x170   :  { %v1108_v62 = vpop.eup %1107  ;;  %v944_v8 = vmul.f32 %v1835_v39, %v874_v17  ;;  %v753_v58 = vadd.f32 1e-05, %v689_v30 }
 0x171   :  { %v754_v59 = vadd.f32 1e-05, %v690_v46  ;;  %v1110_v10 = vpop.eup %1109  ;;  %1007 = vst.msk [vmem:[%s2351_s2 + $0xd8] sm:$0xff] %vm76_vm0, %v943_v31  ;;  %v875_v9 = vmul.f32 %v1206_v11, %v1108_v62  ;;  %v575_v48 = vpop.xlane.xlu1 %574  ;;  %v1214_v46 = vld [vmem:[%s2349_s0 + $0x128] sm:$0xff] }
 0x172   :  { %v578_v49 = vpop.xlane.xlu0 %577  ;;  %1008 = vst.msk [vmem:[%s2351_s2 + $0xe0] sm:$0xff] %vm76_vm0, %v944_v8  ;;  %v876_v33 = vmul.f32 %v1207_v32, %v1110_v10  ;;  %1119 = vrsqrt.f32 %v753_v58  ;;  %v691_v63 = vmul.f32 0.020833334, %v575_v48  ;;  %v1215_v58 = vld [vmem:[%s2349_s0 + $0x130] sm:$0xff] }
 0x173   :  { %v692_v14 = vmul.f32 0.020833334, %v578_v49  ;;  %v945_v20 = vmul.f32 %v1835_v39, %v875_v9  ;;  %1121 = vrsqrt.f32 %v754_v59 }
 0x174   :  { %v1112_v18 = vpop.eup %1111  ;;  %v946_v19 = vmul.f32 %v1835_v39, %v876_v33  ;;  %v755_v21 = vadd.f32 1e-05, %v691_v63 }
 0x175   :  { %v756_v15 = vadd.f32 1e-05, %v692_v14  ;;  %v1114_v0 = vpop.eup %1113  ;;  %1009 = vst.msk [vmem:[%s2351_s2 + $0xe8] sm:$0xff] %vm76_vm0, %v945_v20  ;;  %v877_v53 = vmul.f32 %v1208_v52, %v1112_v18  ;;  %v581_v55 = vpop.xlane.xlu1 %580  ;;  %v1216_v14 = vld [vmem:[%s2349_s0 + $0x138] sm:$0xff] }
 0x176   :  { %v584_v1 = vpop.xlane.xlu0 %583  ;;  %1010 = vst.msk [vmem:[%s2351_s2 + $0xf0] sm:$0xff] %vm76_vm0, %v946_v19  ;;  %v878_v26 = vmul.f32 %v1209_v36, %v1114_v0  ;;  %1123 = vrsqrt.f32 %v755_v21  ;;  %v693_v27 = vmul.f32 0.020833334, %v581_v55  ;;  %v1217_v21 = vld [vmem:[%s2349_s0 + $0x140] sm:$0xff] }
 0x177   :  { %v694_v37 = vmul.f32 0.020833334, %v584_v1  ;;  %v947_v54 = vmul.f32 %v1835_v39, %v877_v53  ;;  %1125 = vrsqrt.f32 %v756_v15 }
 0x178   :  { %v1116_v23 = vpop.eup %1115  ;;  %v948_v12 = vmul.f32 %v1835_v39, %v878_v26  ;;  %v757_v13 = vadd.f32 1e-05, %v693_v27 }
 0x179   :  { %v758_v56 = vadd.f32 1e-05, %v694_v37  ;;  %v1118_v57 = vpop.eup %1117  ;;  %1011 = vst.msk [vmem:[%s2351_s2 + $0xf8] sm:$0xff] %vm76_vm0, %v947_v54  ;;  %v879_v34 = vmul.f32 %v1210_v24, %v1116_v23  ;;  %v587_v35 = vpop.xlane.xlu1 %586  ;;  %v1218_v37 = vld [vmem:[%s2349_s0 + $0x148] sm:$0xff] }
 0x17a   :  { %v590_v25 = vpop.xlane.xlu0 %589  ;;  %1012 = vst.msk [vmem:[%s2351_s2 + $0x100] sm:$0xff] %vm76_vm0, %v948_v12  ;;  %v880_v38 = vmul.f32 %v1211_v22, %v1118_v57  ;;  %1127 = vrsqrt.f32 %v757_v13  ;;  %v695_v40 = vmul.f32 0.020833334, %v587_v35  ;;  %v1219_v13 = vld [vmem:[%s2349_s0 + $0x150] sm:$0xff] }
 0x17b   :  { %v696_v41 = vmul.f32 0.020833334, %v590_v25  ;;  %v949_v2 = vmul.f32 %v1835_v39, %v879_v34  ;;  %1129 = vrsqrt.f32 %v758_v56 }
 0x17c   :  { %v1120_v60 = vpop.eup %1119  ;;  %v950_v61 = vmul.f32 %v1835_v39, %v880_v38  ;;  %v759_v42 = vadd.f32 1e-05, %v695_v40 }
 0x17d   :  { %v760_v43 = vadd.f32 1e-05, %v696_v41  ;;  %v1122_v5 = vpop.eup %1121  ;;  %1013 = vst.msk [vmem:[%s2351_s2 + $0x108] sm:$0xff] %vm76_vm0, %v949_v2  ;;  %v881_v47 = vmul.f32 %v1212_v7, %v1120_v60  ;;  %v593_v6 = vpop.xlane.xlu1 %592  ;;  %v1220_v41 = vld [vmem:[%s2349_s0 + $0x158] sm:$0xff] }
 0x17e   :  { %v596_v28 = vpop.xlane.xlu0 %595  ;;  %1014 = vst.msk [vmem:[%s2351_s2 + $0x110] sm:$0xff] %vm76_vm0, %v950_v61  ;;  %v882_v44 = vmul.f32 %v1213_v29, %v1122_v5  ;;  %1131 = vrsqrt.f32 %v759_v42  ;;  %v697_v50 = vmul.f32 0.020833334, %v593_v6  ;;  %v1221_v42 = vld [vmem:[%s2349_s0 + $0x160] sm:$0xff] }
 0x17f   :  { %v698_v51 = vmul.f32 0.020833334, %v596_v28  ;;  %v951_v3 = vmul.f32 %v1835_v39, %v881_v47  ;;  %1133 = vrsqrt.f32 %v760_v43 }
 0x180   :  { %v1124_v4 = vpop.eup %1123  ;;  %v952_v45 = vmul.f32 %v1835_v39, %v882_v44  ;;  %v761_v16 = vadd.f32 1e-05, %v697_v50 }
 0x181   :  { %v762_v17 = vadd.f32 1e-05, %v698_v51  ;;  %v1126_v30 = vpop.eup %1125  ;;  %1015 = vst.msk [vmem:[%s2351_s2 + $0x118] sm:$0xff] %vm76_vm0, %v951_v3  ;;  %v883_v31 = vmul.f32 %v1214_v46, %v1124_v4  ;;  %v599_v62 = vpop.xlane.xlu1 %598  ;;  %v1222_v51 = vld [vmem:[%s2349_s0 + $0x168] sm:$0xff] }
 0x182   :  { %v602_v8 = vpop.xlane.xlu0 %601  ;;  %1016 = vst.msk [vmem:[%s2351_s2 + $0x120] sm:$0xff] %vm76_vm0, %v952_v45  ;;  %v884_v59 = vmul.f32 %v1215_v58, %v1126_v30  ;;  %1135 = vrsqrt.f32 %v761_v16  ;;  %v699_v10 = vmul.f32 0.020833334, %v599_v62  ;;  %v1223_v16 = vld [vmem:[%s2349_s0 + $0x170] sm:$0xff] }
 0x183   :  { %v700_v11 = vmul.f32 0.020833334, %v602_v8  ;;  %v953_v9 = vmul.f32 %v1835_v39, %v883_v31  ;;  %1137 = vrsqrt.f32 %v762_v17 }
 0x184   :  { %v1128_v48 = vpop.eup %1127  ;;  %v954_v49 = vmul.f32 %v1835_v39, %v884_v59  ;;  %v763_v32 = vadd.f32 1e-05, %v699_v10 }
 0x185   :  { %v764_v33 = vadd.f32 1e-05, %v700_v11  ;;  %v1130_v63 = vpop.eup %1129  ;;  %1017 = vst.msk [vmem:[%s2351_s2 + $0x128] sm:$0xff] %vm76_vm0, %v953_v9  ;;  %v885_v20 = vmul.f32 %v1216_v14, %v1128_v48  ;;  %v605_v18 = vpop.xlane.xlu1 %604  ;;  %v1224_v11 = vld [vmem:[%s2349_s0 + $0x178] sm:$0xff] }
 0x186   :  { %v608_v19 = vpop.xlane.xlu0 %607  ;;  %1018 = vst.msk [vmem:[%s2351_s2 + $0x130] sm:$0xff] %vm76_vm0, %v954_v49  ;;  %v886_v15 = vmul.f32 %v1217_v21, %v1130_v63  ;;  %1139 = vrsqrt.f32 %v763_v32  ;;  %v701_v0 = vmul.f32 0.020833334, %v605_v18  ;;  %v1225_v32 = vld [vmem:[%s2349_s0 + $0x180] sm:$0xff] }
 0x187   :  { %v702_v52 = vmul.f32 0.020833334, %v608_v19  ;;  %v955_v53 = vmul.f32 %v1835_v39, %v885_v20  ;;  %1141 = vrsqrt.f32 %v764_v33 }
 0x188   :  { %v1132_v55 = vpop.eup %1131  ;;  %v956_v1 = vmul.f32 %v1835_v39, %v886_v15  ;;  %v765_v36 = vadd.f32 1e-05, %v701_v0 }
 0x189   :  { %v766_v26 = vadd.f32 1e-05, %v702_v52  ;;  %v1134_v27 = vpop.eup %1133  ;;  %1019 = vst.msk [vmem:[%s2351_s2 + $0x138] sm:$0xff] %vm76_vm0, %v955_v53  ;;  %v887_v54 = vmul.f32 %v1218_v37, %v1132_v55  ;;  %v611_v23 = vpop.xlane.xlu1 %610  ;;  %v1226_v52 = vld [vmem:[%s2349_s0 + $0x188] sm:$0xff] }
 0x18a   :  { %v614_v12 = vpop.xlane.xlu0 %613  ;;  %1020 = vst.msk [vmem:[%s2351_s2 + $0x140] sm:$0xff] %vm76_vm0, %v956_v1  ;;  %v888_v56 = vmul.f32 %v1219_v13, %v1134_v27  ;;  %1143 = vrsqrt.f32 %v765_v36  ;;  %v703_v57 = vmul.f32 0.020833334, %v611_v23  ;;  %v1227_v36 = vld [vmem:[%s2349_s0 + $0x190] sm:$0xff] }
 0x18b   :  { %v704_v24 = vmul.f32 0.020833334, %v614_v12  ;;  %v957_v34 = vmul.f32 %v1835_v39, %v887_v54  ;;  %1145 = vrsqrt.f32 %v766_v26 }
 0x18c   :  { %v1136_v35 = vpop.eup %1135  ;;  %v958_v25 = vmul.f32 %v1835_v39, %v888_v56  ;;  %v767_v22 = vadd.f32 1e-05, %v703_v57 }
 0x18d   :  { %v768_v38 = vadd.f32 1e-05, %v704_v24  ;;  %v1138_v40 = vpop.eup %1137  ;;  %1021 = vst.msk [vmem:[%s2351_s2 + $0x148] sm:$0xff] %vm76_vm0, %v957_v34  ;;  %v889_v2 = vmul.f32 %v1220_v41, %v1136_v35  ;;  %v617_v60 = vpop.xlane.xlu1 %616  ;;  %v1228_v24 = vld [vmem:[%s2349_s0 + $0x198] sm:$0xff] }
 0x18e   :  { %v620_v61 = vpop.xlane.xlu0 %619  ;;  %1022 = vst.msk [vmem:[%s2351_s2 + $0x150] sm:$0xff] %vm76_vm0, %v958_v25  ;;  %v890_v43 = vmul.f32 %v1221_v42, %v1138_v40  ;;  %1147 = vrsqrt.f32 %v767_v22  ;;  %v705_v5 = vmul.f32 0.020833334, %v617_v60  ;;  %v1229_v22 = vld [vmem:[%s2349_s0 + $0x1a0] sm:$0xff] }
 0x18f   :  { %v706_v7 = vmul.f32 0.020833334, %v620_v61  ;;  %v959_v47 = vmul.f32 %v1835_v39, %v889_v2  ;;  %1149 = vrsqrt.f32 %v768_v38 }
 0x190   :  { %v1140_v6 = vpop.eup %1139  ;;  %v960_v28 = vmul.f32 %v1835_v39, %v890_v43  ;;  %v769_v29 = vadd.f32 1e-05, %v705_v5 }
 0x191   :  { %v770_v44 = vadd.f32 1e-05, %v706_v7  ;;  %v1142_v50 = vpop.eup %1141  ;;  %1023 = vst.msk [vmem:[%s2351_s2 + $0x158] sm:$0xff] %vm76_vm0, %v959_v47  ;;  %v891_v3 = vmul.f32 %v1222_v51, %v1140_v6  ;;  %v623_v4 = vpop.xlane.xlu1 %622  ;;  %v1230_v7 = vld [vmem:[%s2349_s0 + $0x1a8] sm:$0xff] }
 0x192   :  { %v626_v45 = vpop.xlane.xlu0 %625  ;;  %1024 = vst.msk [vmem:[%s2351_s2 + $0x160] sm:$0xff] %vm76_vm0, %v960_v28  ;;  %v892_v17 = vmul.f32 %v1223_v16, %v1142_v50  ;;  %1151 = vrsqrt.f32 %v769_v29  ;;  %v707_v30 = vmul.f32 0.020833334, %v623_v4  ;;  %v1231_v29 = vld [vmem:[%s2349_s0 + $0x1b0] sm:$0xff] }
 0x193   :  { %v708_v46 = vmul.f32 0.020833334, %v626_v45  ;;  %v961_v31 = vmul.f32 %v1835_v39, %v891_v3  ;;  %1153 = vrsqrt.f32 %v770_v44 }
 0x194   :  { %v1144_v62 = vpop.eup %1143  ;;  %v962_v8 = vmul.f32 %v1835_v39, %v892_v17  ;;  %v771_v58 = vadd.f32 1e-05, %v707_v30 }
 0x195   :  { %v772_v59 = vadd.f32 1e-05, %v708_v46  ;;  %v1146_v10 = vpop.eup %1145  ;;  %1025 = vst.msk [vmem:[%s2351_s2 + $0x168] sm:$0xff] %vm76_vm0, %v961_v31  ;;  %v893_v9 = vmul.f32 %v1224_v11, %v1144_v62  ;;  %v629_v48 = vpop.xlane.xlu1 %628  ;;  %v1232_v46 = vld [vmem:[%s2349_s0 + $0x1b8] sm:$0xff] }
 0x196   :  { %v632_v49 = vpop.xlane.xlu0 %631  ;;  %1026 = vst.msk [vmem:[%s2351_s2 + $0x170] sm:$0xff] %vm76_vm0, %v962_v8  ;;  %v894_v33 = vmul.f32 %v1225_v32, %v1146_v10  ;;  %1155 = vrsqrt.f32 %v771_v58  ;;  %v709_v63 = vmul.f32 0.020833334, %v629_v48  ;;  %v1233_v8 = vld [vmem:[%s2349_s0 + $0x1c0] sm:$0xff]  ;;  %v1234_v32 = vld [vmem:[%s2349_s0 + $0x1c8] sm:$0xff] }
 0x197   :  { %v710_v14 = vmul.f32 0.020833334, %v632_v49  ;;  %v963_v20 = vmul.f32 %v1835_v39, %v893_v9  ;;  %1157 = vrsqrt.f32 %v772_v59 }
 0x198   :  { %v1148_v18 = vpop.eup %1147  ;;  %v964_v19 = vmul.f32 %v1835_v39, %v894_v33  ;;  %v773_v21 = vadd.f32 1e-05, %v709_v63  ;;  %v1235_v63 = vld [vmem:[%s2349_s0 + $0x1d0] sm:$0xff] }
 0x199   :  { %v774_v15 = vadd.f32 1e-05, %v710_v14  ;;  %v1150_v0 = vpop.eup %1149  ;;  %1027 = vst.msk [vmem:[%s2351_s2 + $0x178] sm:$0xff] %vm76_vm0, %v963_v20  ;;  %v895_v53 = vmul.f32 %v1226_v52, %v1148_v18  ;;  %v635_v55 = vpop.xlane.xlu1 %634  ;;  %v1237_v52 = vld [vmem:[%s2349_s0 + $0x1e0] sm:$0xff] }
 0x19a   :  { %v638_v1 = vpop.xlane.xlu0 %637  ;;  %1028 = vst.msk [vmem:[%s2351_s2 + $0x180] sm:$0xff] %vm76_vm0, %v964_v19  ;;  %v896_v26 = vmul.f32 %v1227_v36, %v1150_v0  ;;  %1159 = vrsqrt.f32 %v773_v21  ;;  %v711_v27 = vmul.f32 0.020833334, %v635_v55 }
 0x19b   :  { %v712_v37 = vmul.f32 0.020833334, %v638_v1  ;;  %v965_v54 = vmul.f32 %v1835_v39, %v895_v53  ;;  %1161 = vrsqrt.f32 %v774_v15  ;;  %v1236_v15 = vld [vmem:[%s2349_s0 + $0x1d8] sm:$0xff] }
 0x19c   :  { %v1152_v23 = vpop.eup %1151  ;;  %v966_v12 = vmul.f32 %v1835_v39, %v896_v26  ;;  %v775_v13 = vadd.f32 1e-05, %v711_v27  ;;  %v1238_v27 = vld [vmem:[%s2349_s0 + $0x1e8] sm:$0xff] }
 0x19d   :  { %v776_v56 = vadd.f32 1e-05, %v712_v37  ;;  %v1154_v57 = vpop.eup %1153  ;;  %1029 = vst.msk [vmem:[%s2351_s2 + $0x188] sm:$0xff] %vm76_vm0, %v965_v54  ;;  %v897_v34 = vmul.f32 %v1228_v24, %v1152_v23  ;;  %v641_v35 = vpop.xlane.xlu1 %640  ;;  %v1239_v54 = vld [vmem:[%s2349_s0 + $0x1f0] sm:$0xff] }
 0x19e   :  { %v644_v25 = vpop.xlane.xlu0 %643  ;;  %1030 = vst.msk [vmem:[%s2351_s2 + $0x190] sm:$0xff] %vm76_vm0, %v966_v12  ;;  %v898_v38 = vmul.f32 %v1229_v22, %v1154_v57  ;;  %1163 = vrsqrt.f32 %v775_v13  ;;  %v713_v40 = vmul.f32 0.020833334, %v641_v35  ;;  %v1240_v57 = vld [vmem:[%s2349_s0 + $0x1f8] sm:$0xff] }
 0x19f   :  { %v714_v41 = vmul.f32 0.020833334, %v644_v25  ;;  %v967_v2 = vmul.f32 %v1835_v39, %v897_v34  ;;  %1165 = vrsqrt.f32 %v776_v56 }
 0x1a0   :  { %v1156_v60 = vpop.eup %1155  ;;  %v968_v61 = vmul.f32 %v1835_v39, %v898_v38  ;;  %v777_v42 = vadd.f32 1e-05, %v713_v40 }
 0x1a1   :  { %v778_v43 = vadd.f32 1e-05, %v714_v41  ;;  %v1158_v5 = vpop.eup %1157  ;;  %1031 = vst.msk [vmem:[%s2351_s2 + $0x198] sm:$0xff] %vm76_vm0, %v967_v2  ;;  %v899_v47 = vmul.f32 %v1230_v7, %v1156_v60  ;;  %v647_v6 = vpop.xlane.xlu1 %646 }
 0x1a2   :  { %v650_v28 = vpop.xlane.xlu0 %649  ;;  %1032 = vst.msk [vmem:[%s2351_s2 + $0x1a0] sm:$0xff] %vm76_vm0, %v968_v61  ;;  %v900_v44 = vmul.f32 %v1231_v29, %v1158_v5  ;;  %1167 = vrsqrt.f32 %v777_v42  ;;  %v715_v50 = vmul.f32 0.020833334, %v647_v6 }
 0x1a3   :  { %v716_v51 = vmul.f32 0.020833334, %v650_v28  ;;  %v969_v3 = vmul.f32 %v1835_v39, %v899_v47  ;;  %1169 = vrsqrt.f32 %v778_v43 }
 0x1a4   :  { %v1160_v4 = vpop.eup %1159  ;;  %v970_v45 = vmul.f32 %v1835_v39, %v900_v44  ;;  %v779_v16 = vadd.f32 1e-05, %v715_v50 }
 0x1a5   :  { %v780_v17 = vadd.f32 1e-05, %v716_v51  ;;  %v1162_v30 = vpop.eup %1161  ;;  %1033 = vst.msk [vmem:[%s2351_s2 + $0x1a8] sm:$0xff] %vm76_vm0, %v969_v3  ;;  %v901_v31 = vmul.f32 %v1232_v46, %v1160_v4  ;;  %v653_v62 = vpop.xlane.xlu1 %652 }
 0x1a6   :  { %1034 = vst.msk [vmem:[%s2351_s2 + $0x1b0] sm:$0xff] %vm76_vm0, %v970_v45  ;;  %v902_v58 = vmul.f32 %v1233_v8, %v1162_v30  ;;  %1171 = vrsqrt.f32 %v779_v16  ;;  %v717_v59 = vmul.f32 0.020833334, %v653_v62 }
 0x1a7   :  { %v971_v10 = vmul.f32 %v1835_v39, %v901_v31  ;;  %1173 = vrsqrt.f32 %v780_v17 }
 0x1a8   :  { %v1164_v11 = vpop.eup %1163  ;;  %v972_v9 = vmul.f32 %v1835_v39, %v902_v58  ;;  %v781_v48 = vadd.f32 1e-05, %v717_v59 }
 0x1a9   :  { %v1166_v49 = vpop.eup %1165  ;;  %1035 = vst.msk [vmem:[%s2351_s2 + $0x1b8] sm:$0xff] %vm76_vm0, %v971_v10  ;;  %v903_v33 = vmul.f32 %v1234_v32, %v1164_v11 }
 0x1aa   :  { %1036 = vst.msk [vmem:[%s2351_s2 + $0x1c0] sm:$0xff] %vm76_vm0, %v972_v9  ;;  %v904_v14 = vmul.f32 %v1235_v63, %v1166_v49  ;;  %1175 = vrsqrt.f32 %v781_v48 }
 0x1ab   :  { %v973_v20 = vmul.f32 %v1835_v39, %v903_v33 }
 0x1ac   :  { %v1168_v18 = vpop.eup %1167  ;;  %v974_v19 = vmul.f32 %v1835_v39, %v904_v14 }
 0x1ad   :  { %v1170_v21 = vpop.eup %1169  ;;  %1037 = vst.msk [vmem:[%s2351_s2 + $0x1c8] sm:$0xff] %vm76_vm0, %v973_v20  ;;  %v905_v0 = vmul.f32 %v1236_v15, %v1168_v18 }
 0x1ae   :  { %1038 = vst.msk [vmem:[%s2351_s2 + $0x1d0] sm:$0xff] %vm76_vm0, %v974_v19  ;;  %v906_v53 = vmul.f32 %v1237_v52, %v1170_v21 }
 0x1af   :  { %v975_v55 = vmul.f32 %v1835_v39, %v905_v0 }
 0x1b0   :  { %v1172_v1 = vpop.eup %1171  ;;  %v976_v36 = vmul.f32 %v1835_v39, %v906_v53 }
 0x1b1   :  { %v1174_v26 = vpop.eup %1173  ;;  %1039 = vst.msk [vmem:[%s2351_s2 + $0x1d8] sm:$0xff] %vm76_vm0, %v975_v55  ;;  %v907_v37 = vmul.f32 %v1238_v27, %v1172_v1 }
 0x1b2   :  { %1040 = vst.msk [vmem:[%s2351_s2 + $0x1e0] sm:$0xff] %vm76_vm0, %v976_v36  ;;  %v908_v23 = vmul.f32 %v1239_v54, %v1174_v26 }
 0x1b3   :  { %v977_v12 = vmul.f32 %v1835_v39, %v907_v37 }
 0x1b4   :  { %v1176_v13 = vpop.eup %1175  ;;  %v978_v56 = vmul.f32 %v1835_v39, %v908_v23 }
 0x1b5   :  { %1041 = vst.msk [vmem:[%s2351_s2 + $0x1e8] sm:$0xff] %vm76_vm0, %v977_v12  ;;  %v909_v24 = vmul.f32 %v1240_v57, %v1176_v13 }
 0x1b6   :  { %1042 = vst.msk [vmem:[%s2351_s2 + $0x1f0] sm:$0xff] %vm76_vm0, %v978_v56 }
 0x1b7   :  { %v979_v34 = vmul.f32 %v1835_v39, %v909_v24 }
 0x1b9   :  { %1043 = vst.msk [vmem:[%s2351_s2 + $0x1f8] sm:$0xff] %vm76_vm0, %v979_v34 }

</bundles_post_ra>
